<compile_context>
chip_gen: v7x
topology: tpu7x:2x2x1
jax: 0.10.0
libtpu: 0.0.40
codegen_flags: <defaults>
</compile_context>

<pallas_src>
import functools

import jax
import jax.numpy as jnp
import numpy as np
from jax.experimental import pallas as pl
from jax.experimental.pallas import tpu as pltpu


# ----------------------------- Pallas kernel --------------------------------
def _pinn_kernel(inp_ref, w0t_ref, wht_ref, bh_ref, wlt_ref, blc_ref, out_ref,
                 *, n_layer, hidden):
    # inp_ref : (8, tile_n)           rows = [x, y, t, dx, dy, 1, 0, 0]
    # w0t_ref : (4H, 8)               packed first layer (bias + seeds in col 5)
    # wht_ref : (n_layer, 4H, 4H)     blockdiag(W^T, W^T, W^T, W^T) per layer
    # bh_ref  : (n_layer, 4H, 1)      bias column (only the h block is nonzero)
    # wlt_ref : (8, 4H)               block final weight
    # blc_ref : (8, 1)                [bl, 0, ..., 0]^T
    # out_ref : (8, tile_n)           rows = [u, du/dx, du/dy, d2u/dx2, 0,0,0,0]
    f32 = jnp.float32
    H = hidden

    def gate(z):
        # ReLU on the value block; chain-rule mask on every tangent block.
        # Tile the h-block preactivation along sublanes (vreg copies), then a
        # single compare + select (vcmp + vsel, no astype/multiply).
        zh = z[:H, :]
        zh4 = jnp.concatenate([zh, zh, zh, zh], axis=0)   # (4H, T)
        return jnp.where(zh4 > 0.0, z, 0.0)

    # Layer 0: one MXU matmul; b0 and the d/dx, d/dy tangent seeds ride on the
    # constant-one input row, so no separate bias/seed handling is needed.
    s = gate(jnp.dot(w0t_ref[...], inp_ref[...], preferred_element_type=f32))

    # Hidden layers (static unroll): one (4H,4H)@(4H,T) matmul + gate each.
    for l in range(n_layer):
        z = jnp.dot(wht_ref[l], s, preferred_element_type=f32) + bh_ref[l]
        s = gate(z)

    # Final block projection straight into the lane-dense output tile.
    out_ref[...] = (jnp.dot(wlt_ref[...], s, preferred_element_type=f32)
                    + blc_ref[...])


# --------------------------- parameter packing (init-time) -------------------
def pack_params(params, n_layer, in_features, hidden):
    """Build the sublane-packed block weights ONCE at init (host-side numpy).

    Returns (w0t, wht, bhc, wlt, blc) as device arrays; no per-call packing ops.
    """
    w0, b0, wh, bh, wl, bl = (np.asarray(p, dtype=np.float32) for p in params)
    H, H4 = hidden, 4 * hidden
    K = 8                                   # padded input rows [x..dy, 1, 0, 0]
    assert in_features + 1 <= K

    # First layer, transposed: columns 0..in_features-1 read the features,
    # column `in_features` is the constant-one row (carries bias + seeds).
    w0t = np.zeros((H4, K), np.float32)
    w0t[0:H, 0:in_features] = w0.T                 # h block:   W0^T @ feats
    w0t[0:H, in_features] = b0                     #            + b0
    w0t[H:2 * H, in_features] = w0[0, :]           # d/dx seed (constant column)
    w0t[2 * H:3 * H, in_features] = w0[1, :]       # d/dy seed
    # d2/dx2 block rows (3H:4H) stay identically zero.

    # Hidden layers: blockdiag(W^T, W^T, W^T, W^T) = kron(I4, W^T).
    eye4 = np.eye(4, dtype=np.float32)
    wht = np.stack([np.kron(eye4, wh[l].T) for l in range(n_layer)])
    bhc = np.zeros((n_layer, H4, 1), np.float32)
    bhc[:, 0:H, 0] = bh                            # bias only on the h block

    # Final layer: row c of the (8, 4H) block weight reads stream c.
    wlt = np.zeros((8, H4), np.float32)
    for c in range(4):
        wlt[c, c * H:(c + 1) * H] = wl[:, 0]
    blc = np.zeros((8, 1), np.float32)
    blc[0, 0] = bl[0]

    return tuple(jnp.asarray(a) for a in (w0t, wht, bhc, wlt, blc))


# ----------------------------- grid sizing ------------------------------------
def _tensorcores_per_chip():
    """v7x / v4 / v5p have 2 TensorCores per chip; v5e / v6e have 1."""
    try:
        kind = jax.devices()[0].device_kind.lower()
    except Exception:
        return 1
    if any(tag in kind for tag in ("v7", "7x", "v4", "v5p")):
        return 2
    return 1


def pick_tile_n(n, max_tile=2048):
    """One grid step on 1-TC chips; split evenly (lane-aligned) on 2-TC chips."""
    cores = _tensorcores_per_chip()
    per_core = -(-n // cores)
    tile = -(-per_core // 128) * 128
    return int(min(max(tile, 128), max_tile))


# ------------------------------ wrapper --------------------------------------
@functools.partial(jax.jit, static_argnames=("n_layer", "hidden", "tile_n"))
def pinn_forward(packed, x, y, t, dxv, dyv, *, n_layer, hidden, tile_n):
    assert n_layer >= 1, "kernel expects at least one hidden layer"
    w0t, wht, bhc, wlt, blc = packed
    H4 = 4 * hidden
    N = x.shape[0]
    num_tiles = -(-N // tile_n)
    N_pad = num_tiles * tile_n

    # Single input-assembly op: (8, N) rows = [x, y, t, dx, dy, 1, 0, 0],
    # batch on the lane axis (lane-dense for the kernel).
    ones = jnp.ones_like(x)
    zeros = jnp.zeros_like(x)
    inp = jnp.stack([x, y, t, dxv, dyv, ones, zeros, zeros],
                    axis=0).astype(jnp.float32)
    if N_pad != N:
        inp = jnp.pad(inp, ((0, 0), (0, N_pad - N)))

    flops = 2 * N_pad * (H4 * 8 + n_layer * H4 * H4 + 8 * H4)
    bytes_accessed = 4 * (inp.size + 8 * N_pad + w0t.size + wht.size
                          + bhc.size + wlt.size + blc.size)

    kernel = functools.partial(_pinn_kernel, n_layer=n_layer, hidden=hidden)

    out = pl.pallas_call(
        kernel,
        out_shape=jax.ShapeDtypeStruct((8, N_pad), jnp.float32),
        grid_spec=pltpu.PrefetchScalarGridSpec(
            num_scalar_prefetch=0,
            grid=(num_tiles,),
            in_specs=[
                pl.BlockSpec((8, tile_n), lambda i: (0, i)),
                pl.BlockSpec((H4, 8), lambda i: (0, 0)),
                pl.BlockSpec((n_layer, H4, H4), lambda i: (0, 0, 0)),
                pl.BlockSpec((n_layer, H4, 1), lambda i: (0, 0, 0)),
                pl.BlockSpec((8, H4), lambda i: (0, 0)),
                pl.BlockSpec((8, 1), lambda i: (0, 0)),
            ],
            out_specs=pl.BlockSpec((8, tile_n), lambda i: (0, i)),
        ),
        compiler_params=pltpu.CompilerParams(
            dimension_semantics=("parallel",)),
        cost_estimate=pl.CostEstimate(
            flops=flops, transcendentals=0, bytes_accessed=bytes_accessed),
    )(inp, w0t, wht, bhc, wlt, blc)

    u_hat = out[0, :N]
    pd_hats = [out[1, :N], out[2, :N], out[3, :N]]   # ['dx', 'dy', 'dxdy']
    # TODO(synk): u_real branch (img_dx / img_dy finite-difference terms) is not
    # exercised — forward is called with u_real=None, so pd_reals == [].
    return {"u_hat": u_hat, "pd_reals": [], "pd_hats": pd_hats}


# --------------------------- parameter init -----------------------------------
def init_params(key, n_layer, in_features, hidden):
    """nn.Linear-style init (uniform(+-1/sqrt(fan_in)))."""
    n_lin = n_layer + 2
    keys = jax.random.split(key, 2 * n_lin)

    def lin(kw, kb, fan_in, fan_out):
        bound = 1.0 / np.sqrt(fan_in)
        W = jax.random.uniform(kw, (fan_in, fan_out), jnp.float32, -bound, bound)
        b = jax.random.uniform(kb, (fan_out,), jnp.float32, -bound, bound)
        return W, b

    w0, b0 = lin(keys[0], keys[1], in_features, hidden)
    whs, bhs = [], []
    for l in range(n_layer):
        W, b = lin(keys[2 + 2 * l], keys[3 + 2 * l], hidden, hidden)
        whs.append(W)
        bhs.append(b)
    wl, bl = lin(keys[-2], keys[-1], hidden, 1)

    return (w0, b0, jnp.stack(whs), jnp.stack(bhs), wl, bl)


# ----------------------------- reference --------------------------------------
def _mlp_ref(params, inp, n_layer):
    w0, b0, wh, bh, wl, bl = params
    h = jax.nn.relu(inp @ w0 + b0)
    for l in range(n_layer):
        h = jax.nn.relu(h @ wh[l] + bh[l])
    return (h @ wl + bl)[:, 0]


# --------------------------------- main ---------------------------------------
if __name__ == "__main__":
    N = 1024
    IN_FEATURES = 5
    HIDDEN = 32       # 4*HIDDEN = 128 packed sublanes (full-width MXU matmuls)
    N_LAYER = 2

    key = jax.random.PRNGKey(0)
    kx, ky, kt, kdx, kdy, kp = jax.random.split(key, 6)
    x = jax.random.normal(kx, (N,), jnp.float32)
    y = jax.random.normal(ky, (N,), jnp.float32)
    t = jax.random.normal(kt, (N,), jnp.float32)
    dxv = jax.random.normal(kdx, (N,), jnp.float32)
    dyv = jax.random.normal(kdy, (N,), jnp.float32)

    params = init_params(kp, N_LAYER, IN_FEATURES, HIDDEN)
    # Packing is done ONCE at init (host-side), not per forward call.
    packed = pack_params(params, N_LAYER, IN_FEATURES, HIDDEN)

    tile_n = pick_tile_n(N)   # 1 grid step on v5e/v6e, 2 parallel steps on v7x

    out = pinn_forward(packed, x, y, t, dxv, dyv,
                       n_layer=N_LAYER, hidden=HIDDEN, tile_n=tile_n)
    jax.block_until_ready(out["u_hat"])

    # ---- correctness check against pure-JAX autodiff reference ----
    def f_of_x(xv):
        return _mlp_ref(params, jnp.stack([xv, y, t, dxv, dyv], -1), N_LAYER)

    def f_of_y(yv):
        return _mlp_ref(params, jnp.stack([x, yv, t, dxv, dyv], -1), N_LAYER)

    u_ref = f_of_x(x)
    _, dudx_ref = jax.jvp(f_of_x, (x,), (jnp.ones_like(x),))
    _, dudy_ref = jax.jvp(f_of_y, (y,), (jnp.ones_like(y),))
    _, d2udx2_ref = jax.jvp(
        lambda xv: jax.jvp(f_of_x, (xv,), (jnp.ones_like(xv),))[1],
        (x,), (jnp.ones_like(x),))

    np.testing.assert_allclose(np.asarray(out["u_hat"]), np.asarray(u_ref),
                               rtol=1e-4, atol=1e-4)
    np.testing.assert_allclose(np.asarray(out["pd_hats"][0]),
                               np.asarray(dudx_ref), rtol=1e-4, atol=1e-4)
    np.testing.assert_allclose(np.asarray(out["pd_hats"][1]),
                               np.asarray(dudy_ref), rtol=1e-4, atol=1e-4)
    np.testing.assert_allclose(np.asarray(out["pd_hats"][2]),
                               np.asarray(d2udx2_ref), rtol=1e-4, atol=1e-4)

    assert out["pd_reals"] == []  # u_real is None in this forward
    print("KERNEL_OK")
</pallas_src>

<mosaic_0001>
module attributes {stable_mosaic.version = 11 : i64} {
  func.func @_pinn_kernel(%arg0: i32, %arg1: memref<8x1024xf32, #tpu.memory_space<vmem>>, %arg2: memref<128x8xf32, #tpu.memory_space<vmem>>, %arg3: memref<2x128x128xf32, #tpu.memory_space<vmem>>, %arg4: memref<2x128x1xf32, #tpu.memory_space<vmem>>, %arg5: memref<8x128xf32, #tpu.memory_space<vmem>>, %arg6: memref<8x1xf32, #tpu.memory_space<vmem>>, %arg7: memref<8x1024xf32, #tpu.memory_space<vmem>>) attributes {dimension_semantics = [#tpu.dimension_semantics<parallel>], iteration_bounds = array<i64: 1>, scalar_prefetch = 0 : i64, scratch_operands = 0 : i64, tpu.core_type = #tpu.core_type<tc>, window_params = [{transform_indices = @transform_0, window_bounds = array<i64: 8, 1024>}, {pipeline_mode = #tpu.pipeline_mode<synchronous>, transform_indices = @transform_1, window_bounds = array<i64: 128, 8>}, {pipeline_mode = #tpu.pipeline_mode<synchronous>, transform_indices = @transform_2, window_bounds = array<i64: 2, 128, 128>}, {pipeline_mode = #tpu.pipeline_mode<synchronous>, transform_indices = @transform_3, window_bounds = array<i64: 2, 128, 1>}, {pipeline_mode = #tpu.pipeline_mode<synchronous>, transform_indices = @transform_4, window_bounds = array<i64: 8, 128>}, {pipeline_mode = #tpu.pipeline_mode<synchronous>, transform_indices = @transform_5, window_bounds = array<i64: 8, 1>}, {transform_indices = @transform_6, window_bounds = array<i64: 8, 1024>}]} {
    %c0 = arith.constant 0 : index
    %c0_0 = arith.constant 0 : index
    %0 = vector.load %arg2[%c0, %c0_0] : memref<128x8xf32, #tpu.memory_space<vmem>>, vector<128x8xf32>
    %c0_1 = arith.constant 0 : index
    %c0_2 = arith.constant 0 : index
    %1 = vector.load %arg1[%c0_1, %c0_2] : memref<8x1024xf32, #tpu.memory_space<vmem>>, vector<8x1024xf32>
    %cst = arith.constant dense<0.000000e+00> : vector<128x1024xf32>
    %2 = tpu.matmul %0, %1, %cst {dimension_numbers = #tpu.dot_dimension_numbers<[1], [0], [0], [1], [0, 0, 1, 1], [], []>} : vector<128x8xf32>, vector<8x1024xf32>, vector<128x1024xf32> -> vector<128x1024xf32>
    %3 = vector.extract_strided_slice %2 {offsets = [0, 0], sizes = [32, 1024], strides = [1, 1]} : vector<128x1024xf32> to vector<32x1024xf32>
    %4 = tpu.concatenate %3, %3, %3, %3 in 0 : vector<32x1024xf32>, vector<32x1024xf32>, vector<32x1024xf32>, vector<32x1024xf32> -> vector<128x1024xf32>
    %cst_3 = arith.constant 0.000000e+00 : f32
    %5 = vector.broadcast %cst_3 : f32 to vector<128x1024xf32>
    %6 = arith.cmpf ogt, %4, %5 : vector<128x1024xf32>
    %cst_4 = arith.constant 0.000000e+00 : f32
    %7 = vector.broadcast %cst_4 : f32 to vector<128x1024xf32>
    %8 = arith.select %6, %2, %7 : vector<128x1024xi1>, vector<128x1024xf32>
    %c0_5 = arith.constant 0 : index
    %c0_6 = arith.constant 0 : index
    %c0_7 = arith.constant 0 : index
    %9 = vector.load %arg3[%c0_5, %c0_6, %c0_7] : memref<2x128x128xf32, #tpu.memory_space<vmem>>, vector<1x128x128xf32>
    %10 = vector.shape_cast %9 : vector<1x128x128xf32> to vector<128x128xf32>
    %cst_8 = arith.constant dense<0.000000e+00> : vector<128x1024xf32>
    %11 = tpu.matmul %10, %8, %cst_8 {dimension_numbers = #tpu.dot_dimension_numbers<[1], [0], [0], [1], [0, 0, 1, 1], [], []>} : vector<128x128xf32>, vector<128x1024xf32>, vector<128x1024xf32> -> vector<128x1024xf32>
    %c0_9 = arith.constant 0 : index
    %c0_10 = arith.constant 0 : index
    %c0_11 = arith.constant 0 : index
    %12 = vector.load %arg4[%c0_9, %c0_10, %c0_11] : memref<2x128x1xf32, #tpu.memory_space<vmem>>, vector<1x128x1xf32>
    %13 = vector.shape_cast %12 : vector<1x128x1xf32> to vector<128x1xf32>
    %14 = vector.broadcast %13 : vector<128x1xf32> to vector<128x1024xf32>
    %15 = arith.addf %11, %14 : vector<128x1024xf32>
    %16 = vector.extract_strided_slice %15 {offsets = [0, 0], sizes = [32, 1024], strides = [1, 1]} : vector<128x1024xf32> to vector<32x1024xf32>
    %17 = tpu.concatenate %16, %16, %16, %16 in 0 : vector<32x1024xf32>, vector<32x1024xf32>, vector<32x1024xf32>, vector<32x1024xf32> -> vector<128x1024xf32>
    %cst_12 = arith.constant 0.000000e+00 : f32
    %18 = vector.broadcast %cst_12 : f32 to vector<128x1024xf32>
    %19 = arith.cmpf ogt, %17, %18 : vector<128x1024xf32>
    %cst_13 = arith.constant 0.000000e+00 : f32
    %20 = vector.broadcast %cst_13 : f32 to vector<128x1024xf32>
    %21 = arith.select %19, %15, %20 : vector<128x1024xi1>, vector<128x1024xf32>
    %c1 = arith.constant 1 : index
    %c0_14 = arith.constant 0 : index
    %c0_15 = arith.constant 0 : index
    %22 = vector.load %arg3[%c1, %c0_14, %c0_15] : memref<2x128x128xf32, #tpu.memory_space<vmem>>, vector<1x128x128xf32>
    %23 = vector.shape_cast %22 : vector<1x128x128xf32> to vector<128x128xf32>
    %cst_16 = arith.constant dense<0.000000e+00> : vector<128x1024xf32>
    %24 = tpu.matmul %23, %21, %cst_16 {dimension_numbers = #tpu.dot_dimension_numbers<[1], [0], [0], [1], [0, 0, 1, 1], [], []>} : vector<128x128xf32>, vector<128x1024xf32>, vector<128x1024xf32> -> vector<128x1024xf32>
    %c1_17 = arith.constant 1 : index
    %c0_18 = arith.constant 0 : index
    %c0_19 = arith.constant 0 : index
    %25 = vector.load %arg4[%c1_17, %c0_18, %c0_19] : memref<2x128x1xf32, #tpu.memory_space<vmem>>, vector<1x128x1xf32>
    %26 = vector.shape_cast %25 : vector<1x128x1xf32> to vector<128x1xf32>
    %27 = vector.broadcast %26 : vector<128x1xf32> to vector<128x1024xf32>
    %28 = arith.addf %24, %27 : vector<128x1024xf32>
    %29 = vector.extract_strided_slice %28 {offsets = [0, 0], sizes = [32, 1024], strides = [1, 1]} : vector<128x1024xf32> to vector<32x1024xf32>
    %30 = tpu.concatenate %29, %29, %29, %29 in 0 : vector<32x1024xf32>, vector<32x1024xf32>, vector<32x1024xf32>, vector<32x1024xf32> -> vector<128x1024xf32>
    %cst_20 = arith.constant 0.000000e+00 : f32
    %31 = vector.broadcast %cst_20 : f32 to vector<128x1024xf32>
    %32 = arith.cmpf ogt, %30, %31 : vector<128x1024xf32>
    %cst_21 = arith.constant 0.000000e+00 : f32
    %33 = vector.broadcast %cst_21 : f32 to vector<128x1024xf32>
    %34 = arith.select %32, %28, %33 : vector<128x1024xi1>, vector<128x1024xf32>
    %c0_22 = arith.constant 0 : index
    %c0_23 = arith.constant 0 : index
    %35 = vector.load %arg5[%c0_22, %c0_23] : memref<8x128xf32, #tpu.memory_space<vmem>>, vector<8x128xf32>
    %cst_24 = arith.constant dense<0.000000e+00> : vector<8x1024xf32>
    %36 = tpu.matmul %35, %34, %cst_24 {dimension_numbers = #tpu.dot_dimension_numbers<[1], [0], [0], [1], [0, 0, 1, 1], [], []>} : vector<8x128xf32>, vector<128x1024xf32>, vector<8x1024xf32> -> vector<8x1024xf32>
    %c0_25 = arith.constant 0 : index
    %c0_26 = arith.constant 0 : index
    %37 = vector.load %arg6[%c0_25, %c0_26] : memref<8x1xf32, #tpu.memory_space<vmem>>, vector<8x1xf32>
    %38 = vector.broadcast %37 : vector<8x1xf32> to vector<8x1024xf32>
    %39 = arith.addf %36, %38 : vector<8x1024xf32>
    %c0_27 = arith.constant 0 : index
    %c0_28 = arith.constant 0 : index
    %40 = vector.load %arg7[%c0_27, %c0_28] : memref<8x1024xf32, #tpu.memory_space<vmem>>, vector<8x1024xf32>
    tpu.vector_store %arg7[%c0_27, %c0_28], %39 {strides = array<i32>} : memref<8x1024xf32, #tpu.memory_space<vmem>>, vector<8x1024xf32>,
    return
  }
  func.func @transform_0(%arg0: i32) -> (i32, i32) {
    %c0_i32 = arith.constant 0 : i32
    %c0_i32_0 = arith.constant 0 : i32
    return %c0_i32, %arg0 : i32, i32
  }
  func.func @transform_1(%arg0: i32) -> (i32, i32) {
    %c0_i32 = arith.constant 0 : i32
    %c0_i32_0 = arith.constant 0 : i32
    %c0_i32_1 = arith.constant 0 : i32
    return %c0_i32, %c0_i32_0 : i32, i32
  }
  func.func @transform_2(%arg0: i32) -> (i32, i32, i32) {
    %c0_i32 = arith.constant 0 : i32
    %c0_i32_0 = arith.constant 0 : i32
    %c0_i32_1 = arith.constant 0 : i32
    %c0_i32_2 = arith.constant 0 : i32
    return %c0_i32, %c0_i32_0, %c0_i32_1 : i32, i32, i32
  }
  func.func @transform_3(%arg0: i32) -> (i32, i32, i32) {
    %c0_i32 = arith.constant 0 : i32
    %c0_i32_0 = arith.constant 0 : i32
    %c0_i32_1 = arith.constant 0 : i32
    %c0_i32_2 = arith.constant 0 : i32
    return %c0_i32, %c0_i32_0, %c0_i32_1 : i32, i32, i32
  }
  func.func @transform_4(%arg0: i32) -> (i32, i32) {
    %c0_i32 = arith.constant 0 : i32
    %c0_i32_0 = arith.constant 0 : i32
    %c0_i32_1 = arith.constant 0 : i32
    return %c0_i32, %c0_i32_0 : i32, i32
  }
  func.func @transform_5(%arg0: i32) -> (i32, i32) {
    %c0_i32 = arith.constant 0 : i32
    %c0_i32_0 = arith.constant 0 : i32
    %c0_i32_1 = arith.constant 0 : i32
    return %c0_i32, %c0_i32_0 : i32, i32
  }
  func.func @transform_6(%arg0: i32) -> (i32, i32) {
    %c0_i32 = arith.constant 0 : i32
    %c0_i32_0 = arith.constant 0 : i32
    return %c0_i32, %arg0 : i32, i32
  }
}

</mosaic_0001>

<bundles_post_ra>
// kernel: pinn_forward.1
= control target key start
LH: loop header
LB: loop body
LE: loop exit
PB: predicated region body
PF: predicated region fallthrough
CT: control target
= control target key end

     0   :  { %v4097_v3 = vmov 0.0   ;;  %vm47_vm0 = vcmask 64512   ;;  %v4098_v25 = vmov 0   ;;  %s5892_s0 = inlined_call_operand.vmem [shape: f32[8,1024], index: 0, kind: input, shape index: {}]   ;;  %s5893_s1 = inlined_call_operand.vmem [shape: f32[128,8], index: 1, kind: input, shape index: {}]   ;;  %s5894_s3 = inlined_call_operand.vmem [shape: f32[2,128,1], index: 3, kind: input, shape index: {}]   ;;  %s5895_s5 = inlined_call_operand.vmem [shape: f32[8,1], index: 5, kind: input, shape index: {}]   ;;  %s5896_s2 = inlined_call_operand.vmem [shape: f32[2,128,128], index: 2, kind: input, shape index: {}]   ;;  %s5897_s4 = inlined_call_operand.vmem [shape: f32[8,128], index: 4, kind: input, shape index: {}]   ;;  %s5898_s6 = inlined_call_operand.vmem [shape: f32[8,1024], index: 6, kind: output, shape index: {}]  }
   0x1   :  { %v40_v0 = vld [vmem:[%s5892_s0 + $0x8] sm:$0xff]  ;;  %v42_v1 = vld [vmem:[%s5892_s0 + $0x18] sm:$0xff]  ;;  %v39_v2 = vld [vmem:[%s5892_s0] sm:$0xff]  ;;  %160 = vmatprep.mubr.f32.mxu0 %v4097_v3  ;;  %321 = vmatprep.mubr.f32.mxu1 %v4097_v3 }
   0x2   :  { %96 = vmatprep.subr.mxu0 %v40_v0  ;;  %257 = vmatprep.subr.mxu1 %v42_v1  ;;  %v41_v4 = vld [vmem:[%s5892_s0 + $0x10] sm:$0xff]  ;;  %v4151_v5 = vld [vmem:[%s5893_s1] sm:$0xff]  ;;  %v44_v6 = vld [vmem:[%s5892_s0 + $0x28] sm:$0xff] }
   0x3   :  { %97 = vmatpush1.msra.mxu0 %v39_v2  ;;  %258 = vmatpush1.msra.mxu1 %v41_v4  ;;  %v46_v7 = vld [vmem:[%s5892_s0 + $0x38] sm:$0xff]  ;;  %v43_v8 = vld [vmem:[%s5892_s0 + $0x20] sm:$0xff]  ;;  %v45_v9 = vld [vmem:[%s5892_s0 + $0x30] sm:$0xff] }
   0x4   :  { %3037 = vmatmul.mubr.msk.f32.vlgmr.msra.gmra.mrb[0].mxu0 %vm47_vm0, %v4151_v5  ;;  %3053 = vmatmul.mubr.msk.f32.vlgmr.msra.gmra.mrb[0].mxu1 %vm47_vm0, %v4151_v5  ;;  %v4174_v10 = vld [vmem:[%s5893_s1 + $0x8] sm:$0xff]  ;;  %v4185_v11 = vld [vmem:[%s5893_s1 + $0x10] sm:$0xff]  ;;  %v4196_v12 = vld [vmem:[%s5893_s1 + $0x18] sm:$0xff] }
   0x5   :  { %166 = vmatprep.mubr.f32.mxu0 %v4097_v3  ;;  %327 = vmatprep.mubr.f32.mxu1 %v4097_v3  ;;  %v4207_v13 = vld [vmem:[%s5893_s1 + $0x20] sm:$0xff]  ;;  %v4218_v14 = vld [vmem:[%s5893_s1 + $0x28] sm:$0xff]  ;;  %v4229_v15 = vld [vmem:[%s5893_s1 + $0x30] sm:$0xff] }
   0x6   :  { %418 = vmatprep.subr.mxu0 %v44_v6  ;;  %579 = vmatprep.subr.mxu1 %v46_v7  ;;  %v4240_v16 = vld [vmem:[%s5893_s1 + $0x38] sm:$0xff]  ;;  %v4251_v17 = vld [vmem:[%s5893_s1 + $0x40] sm:$0xff]  ;;  %v4262_v18 = vld [vmem:[%s5893_s1 + $0x48] sm:$0xff] }
   0x7   :  { %419 = vmatpush1.msra.mxu0 %v43_v8  ;;  %580 = vmatpush1.msra.mxu1 %v45_v9  ;;  %v4273_v19 = vld [vmem:[%s5893_s1 + $0x50] sm:$0xff]  ;;  %v4284_v20 = vld [vmem:[%s5893_s1 + $0x58] sm:$0xff]  ;;  %v4295_v21 = vld [vmem:[%s5893_s1 + $0x60] sm:$0xff] }
   0x8   :  { %3038 = vmatmul.mubr.msk.f32.gmra.mrb[2].mxu0 %vm47_vm0, %v4174_v10  ;;  %3054 = vmatmul.mubr.msk.f32.gmra.mrb[2].mxu1 %vm47_vm0, %v4174_v10  ;;  %v4306_v22 = vld [vmem:[%s5893_s1 + $0x68] sm:$0xff]  ;;  %v4317_v23 = vld [vmem:[%s5893_s1 + $0x70] sm:$0xff]  ;;  %v4328_v24 = vld [vmem:[%s5893_s1 + $0x78] sm:$0xff] }
   0x9   :  { %172 = vmatprep.mubr.f32.mxu0 %v4097_v3  ;;  %333 = vmatprep.mubr.f32.mxu1 %v4097_v3  ;;  %v916_v26 = vld [vmem:[%s5894_s3] sm:$0xff]  ;;  %v917_v27 = vld [vmem:[%s5894_s3 + $0x8] sm:$0xff]  ;;  %v918_v29 = vld [vmem:[%s5894_s3 + $0x10] sm:$0xff] }
   0xa   :  { %4095 = vset.pattern.permute.xlu0 %v4098_v25  ;;  %4096 = vset.pattern.permute.xlu1 %v4098_v25  ;;  %v920_v28 = vld [vmem:[%s5894_s3 + $0x20] sm:$0xff]  ;;  %v922_v30 = vld [vmem:[%s5894_s3 + $0x30] sm:$0xff]  ;;  %v919_v31 = vld [vmem:[%s5894_s3 + $0x18] sm:$0xff] }
   0xb   :  { %934 = vperm.xlu0 %4095, %v916_v26   ;;  %944 = vperm.xlu1 %4096, %v918_v29   ;;  %v924_v32 = vld [vmem:[%s5894_s3 + $0x40] sm:$0xff]  ;;  %v921_v33 = vld [vmem:[%s5894_s3 + $0x28] sm:$0xff]  ;;  %v926_v34 = vld [vmem:[%s5894_s3 + $0x50] sm:$0xff] }
   0xc   :  { %3039 = vmatmul.mubr.msk.f32.gmra.mrb[4].mxu0 %vm47_vm0, %v4185_v11  ;;  %3055 = vmatmul.mubr.msk.f32.gmra.mrb[4].mxu1 %vm47_vm0, %v4185_v11  ;;  %v923_v35 = vld [vmem:[%s5894_s3 + $0x38] sm:$0xff]  ;;  %v928_v36 = vld [vmem:[%s5894_s3 + $0x60] sm:$0xff]  ;;  %v925_v37 = vld [vmem:[%s5894_s3 + $0x48] sm:$0xff] }
   0xd   :  { %178 = vmatprep.mubr.f32.mxu0 %v4097_v3  ;;  %339 = vmatprep.mubr.f32.mxu1 %v4097_v3  ;;  %v930_v38 = vld [vmem:[%s5894_s3 + $0x70] sm:$0xff]  ;;  %v927_v39 = vld [vmem:[%s5894_s3 + $0x58] sm:$0xff]  ;;  %v3245_v40 = vld [vmem:[%s5894_s3 + $0x80] sm:$0xff] }
   0xe   :  { %v929_v41 = vld [vmem:[%s5894_s3 + $0x68] sm:$0xff]  ;;  %v3247_v42 = vld [vmem:[%s5894_s3 + $0x90] sm:$0xff]  ;;  %v931_v47 = vld [vmem:[%s5894_s3 + $0x78] sm:$0xff] }
   0xf   :  { %939 = vperm.xlu0 %4095, %v917_v27   ;;  %949 = vperm.xlu1 %4096, %v919_v31   ;;  %v3249_v48 = vld [vmem:[%s5894_s3 + $0xa0] sm:$0xff]  ;;  %v3246_v55 = vld [vmem:[%s5894_s3 + $0x88] sm:$0xff]  ;;  %v3251_v56 = vld [vmem:[%s5894_s3 + $0xb0] sm:$0xff] }
  0x10   :  { %3040 = vmatmul.mubr.msk.f32.gmra.mrb[6].mxu0 %vm47_vm0, %v4196_v12  ;;  %3056 = vmatmul.mubr.msk.f32.gmra.mrb[6].mxu1 %vm47_vm0, %v4196_v12  ;;  %v3248_v4 = vld [vmem:[%s5894_s3 + $0x98] sm:$0xff]  ;;  %v3257_v25 = vld [vmem:[%s5894_s3 + $0xe0] sm:$0xff] }
  0x11   :  { %184 = vmatprep.mubr.f32.mxu0 %v4097_v3  ;;  %345 = vmatprep.mubr.f32.mxu1 %v4097_v3  ;;  %v4632_v60 = vld [vmem:[%s5896_s2] sm:$0xff] }
  0x13   :  { %954 = vperm.xlu0 %4095, %v920_v28   ;;  %959 = vperm.xlu1 %4096, %v921_v33  }
  0x14   :  { %3041 = vmatmul.mubr.msk.f32.gmra.mrb[8].mxu0 %vm47_vm0, %v4207_v13  ;;  %3057 = vmatmul.mubr.msk.f32.gmra.mrb[8].mxu1 %vm47_vm0, %v4207_v13 }
  0x15   :  { %190 = vmatprep.mubr.f32.mxu0 %v4097_v3  ;;  %351 = vmatprep.mubr.f32.mxu1 %v4097_v3 }
  0x17   :  { %964 = vperm.xlu0 %4095, %v922_v30   ;;  %969 = vperm.xlu1 %4096, %v923_v35   ;;  %v3259_v35 = vld [vmem:[%s5894_s3 + $0xf0] sm:$0xff] }
  0x18   :  { %3042 = vmatmul.mubr.msk.f32.gmra.mrb[10].mxu0 %vm47_vm0, %v4218_v14  ;;  %3058 = vmatmul.mubr.msk.f32.gmra.mrb[10].mxu1 %vm47_vm0, %v4218_v14 }
  0x19   :  { %196 = vmatprep.mubr.f32.mxu0 %v4097_v3  ;;  %357 = vmatprep.mubr.f32.mxu1 %v4097_v3 }
  0x1b   :  { %974 = vperm.xlu0 %4095, %v924_v32   ;;  %979 = vperm.xlu1 %4096, %v925_v37   ;;  %v3254_v32 = vld [vmem:[%s5894_s3 + $0xc8] sm:$0xff] }
  0x1c   :  { %3043 = vmatmul.mubr.msk.f32.gmra.mrb[12].mxu0 %vm47_vm0, %v4229_v15  ;;  %3059 = vmatmul.mubr.msk.f32.gmra.mrb[12].mxu1 %vm47_vm0, %v4229_v15 }
  0x1d   :  { %202 = vmatprep.mubr.f32.mxu0 %v4097_v3  ;;  %363 = vmatprep.mubr.f32.mxu1 %v4097_v3 }
  0x1f   :  { %984 = vperm.xlu0 %4095, %v926_v34   ;;  %989 = vperm.xlu1 %4096, %v927_v39  }
  0x20   :  { %3044 = vmatmul.mubr.msk.f32.gmra.mrb[14].mxu0 %vm47_vm0, %v4240_v16  ;;  %3060 = vmatmul.mubr.msk.f32.gmra.mrb[14].mxu1 %vm47_vm0, %v4240_v16 }
  0x21   :  { %208 = vmatprep.mubr.f32.mxu0 %v4097_v3  ;;  %369 = vmatprep.mubr.f32.mxu1 %v4097_v3 }
  0x23   :  { %994 = vperm.xlu0 %4095, %v928_v36   ;;  %999 = vperm.xlu1 %4096, %v929_v41   ;;  %v2735_v41 = vld [vmem:[%s5895_s5] sm:$0xff] }
  0x24   :  { %3045 = vmatmul.mubr.msk.f32.gmra.mrb[16].mxu0 %vm47_vm0, %v4251_v17  ;;  %3061 = vmatmul.mubr.msk.f32.gmra.mrb[16].mxu1 %vm47_vm0, %v4251_v17 }
  0x25   :  { %214 = vmatprep.mubr.f32.mxu0 %v4097_v3  ;;  %375 = vmatprep.mubr.f32.mxu1 %v4097_v3 }
  0x27   :  { %1004 = vperm.xlu0 %4095, %v930_v38   ;;  %1009 = vperm.xlu1 %4096, %v931_v47  }
  0x28   :  { %3046 = vmatmul.mubr.msk.f32.gmra.mrb[18].mxu0 %vm47_vm0, %v4262_v18  ;;  %3062 = vmatmul.mubr.msk.f32.gmra.mrb[18].mxu1 %vm47_vm0, %v4262_v18 }
  0x29   :  { %220 = vmatprep.mubr.f32.mxu0 %v4097_v3  ;;  %381 = vmatprep.mubr.f32.mxu1 %v4097_v3 }
  0x2b   :  { %1852 = vperm.xlu0 %4095, %v3245_v40   ;;  %1857 = vperm.xlu1 %4096, %v3246_v55   ;;  %v3256_v40 = vld [vmem:[%s5894_s3 + $0xd8] sm:$0xff] }
  0x2c   :  { %3047 = vmatmul.mubr.msk.f32.gmra.mrb[20].mxu0 %vm47_vm0, %v4273_v19  ;;  %3063 = vmatmul.mubr.msk.f32.gmra.mrb[20].mxu1 %vm47_vm0, %v4273_v19  ;;  %v3260_v55 = vld [vmem:[%s5894_s3 + $0xf8] sm:$0xff] }
  0x2d   :  { %226 = vmatprep.mubr.f32.mxu0 %v4097_v3  ;;  %387 = vmatprep.mubr.f32.mxu1 %v4097_v3 }
  0x2f   :  { %1862 = vperm.xlu0 %4095, %v3247_v42   ;;  %1867 = vperm.xlu1 %4096, %v3248_v4  }
  0x30   :  { %3048 = vmatmul.mubr.msk.f32.gmra.mrb[22].mxu0 %vm47_vm0, %v4284_v20  ;;  %3064 = vmatmul.mubr.msk.f32.gmra.mrb[22].mxu1 %vm47_vm0, %v4284_v20 }
  0x31   :  { %232 = vmatprep.mubr.f32.mxu0 %v4097_v3  ;;  %393 = vmatprep.mubr.f32.mxu1 %v4097_v3 }
  0x33   :  { %1872 = vperm.xlu0 %4095, %v3249_v48   ;;  %v3258_v48 = vld [vmem:[%s5894_s3 + $0xe8] sm:$0xff] }
  0x34   :  { %3049 = vmatmul.mubr.msk.f32.gmra.mrb[24].mxu0 %vm47_vm0, %v4295_v21  ;;  %3065 = vmatmul.mubr.msk.f32.gmra.mrb[24].mxu1 %vm47_vm0, %v4295_v21 }
  0x35   :  { %238 = vmatprep.mubr.f32.mxu0 %v4097_v3  ;;  %399 = vmatprep.mubr.f32.mxu1 %v4097_v3 }
  0x37   :  { %1882 = vperm.xlu0 %4095, %v3251_v56  }
  0x38   :  { %3050 = vmatmul.mubr.msk.f32.gmra.mrb[26].mxu0 %vm47_vm0, %v4306_v22  ;;  %3066 = vmatmul.mubr.msk.f32.gmra.mrb[26].mxu1 %vm47_vm0, %v4306_v22 }
  0x39   :  { %244 = vmatprep.mubr.f32.mxu0 %v4097_v3  ;;  %405 = vmatprep.mubr.f32.mxu1 %v4097_v3 }
  0x3c   :  { %3051 = vmatmul.mubr.msk.f32.gmra.mrb[28].mxu0 %vm47_vm0, %v4317_v23  ;;  %3067 = vmatmul.mubr.msk.f32.gmra.mrb[28].mxu1 %vm47_vm0, %v4317_v23 }
  0x3d   :  { %250 = vmatprep.mubr.f32.mxu0 %v4097_v3  ;;  %411 = vmatprep.mubr.f32.mxu1 %v4097_v3 }
  0x40   :  { %3052 = vmatmul.mubr.msk.f32.gmra.mrb[30].mxu0 %vm47_vm0, %v4328_v24  ;;  %3068 = vmatmul.mubr.msk.f32.gmra.mrb[30].mxu1 %vm47_vm0, %v4328_v24 }
  0x41   :  { %482 = vmatprep.mubr.f32.mxu0 %v4097_v3  ;;  %643 = vmatprep.mubr.f32.mxu1 %v4097_v3 }
  0x44   :  { %3069 = vmatmul.mubr.msk.f32.vlgmr.msra.gmra.mrb[32].mxu0 %vm47_vm0, %v4151_v5  ;;  %3085 = vmatmul.mubr.msk.f32.vlgmr.msra.gmra.mrb[32].mxu1 %vm47_vm0, %v4151_v5  ;;  %v3253_v5 = vld [vmem:[%s5894_s3 + $0xc0] sm:$0xff] }
  0x45   :  { %488 = vmatprep.mubr.f32.mxu0 %v4097_v3  ;;  %649 = vmatprep.mubr.f32.mxu1 %v4097_v3 }
  0x46   :  { %1892 = vperm.xlu0 %4095, %v3253_v5  }
  0x48   :  { %3070 = vmatmul.mubr.msk.f32.gmra.mrb[34].mxu0 %vm47_vm0, %v4174_v10  ;;  %3086 = vmatmul.mubr.msk.f32.gmra.mrb[34].mxu1 %vm47_vm0, %v4174_v10 }
  0x49   :  { %494 = vmatprep.mubr.f32.mxu0 %v4097_v3  ;;  %655 = vmatprep.mubr.f32.mxu1 %v4097_v3 }
  0x4c   :  { %3071 = vmatmul.mubr.msk.f32.gmra.mrb[36].mxu0 %vm47_vm0, %v4185_v11  ;;  %3087 = vmatmul.mubr.msk.f32.gmra.mrb[36].mxu1 %vm47_vm0, %v4185_v11 }
  0x4d   :  { %500 = vmatprep.mubr.f32.mxu0 %v4097_v3  ;;  %661 = vmatprep.mubr.f32.mxu1 %v4097_v3 }
  0x50   :  { %3072 = vmatmul.mubr.msk.f32.gmra.mrb[38].mxu0 %vm47_vm0, %v4196_v12  ;;  %3088 = vmatmul.mubr.msk.f32.gmra.mrb[38].mxu1 %vm47_vm0, %v4196_v12  ;;  %v3250_v12 = vld [vmem:[%s5894_s3 + $0xa8] sm:$0xff] }
  0x51   :  { %506 = vmatprep.mubr.f32.mxu0 %v4097_v3  ;;  %667 = vmatprep.mubr.f32.mxu1 %v4097_v3 }
  0x52   :  { %1877 = vperm.xlu1 %4096, %v3250_v12  }
  0x54   :  { %3073 = vmatmul.mubr.msk.f32.gmra.mrb[40].mxu0 %vm47_vm0, %v4207_v13  ;;  %3089 = vmatmul.mubr.msk.f32.gmra.mrb[40].mxu1 %vm47_vm0, %v4207_v13  ;;  %v3255_v13 = vld [vmem:[%s5894_s3 + $0xd0] sm:$0xff] }
  0x55   :  { %512 = vmatprep.mubr.f32.mxu0 %v4097_v3  ;;  %673 = vmatprep.mubr.f32.mxu1 %v4097_v3 }
  0x56   :  { %1902 = vperm.xlu0 %4095, %v3255_v13  }
  0x58   :  { %3074 = vmatmul.mubr.msk.f32.gmra.mrb[42].mxu0 %vm47_vm0, %v4218_v14  ;;  %3090 = vmatmul.mubr.msk.f32.gmra.mrb[42].mxu1 %vm47_vm0, %v4218_v14 }
  0x59   :  { %518 = vmatprep.mubr.f32.mxu0 %v4097_v3  ;;  %679 = vmatprep.mubr.f32.mxu1 %v4097_v3 }
  0x5a   :  { %1912 = vperm.xlu0 %4095, %v3257_v25  }
  0x5c   :  { %3075 = vmatmul.mubr.msk.f32.gmra.mrb[44].mxu0 %vm47_vm0, %v4229_v15  ;;  %3091 = vmatmul.mubr.msk.f32.gmra.mrb[44].mxu1 %vm47_vm0, %v4229_v15 }
  0x5d   :  { %524 = vmatprep.mubr.f32.mxu0 %v4097_v3  ;;  %685 = vmatprep.mubr.f32.mxu1 %v4097_v3 }
  0x5e   :  { %1922 = vperm.xlu0 %4095, %v3259_v35  }
  0x60   :  { %3076 = vmatmul.mubr.msk.f32.gmra.mrb[46].mxu0 %vm47_vm0, %v4240_v16  ;;  %3092 = vmatmul.mubr.msk.f32.gmra.mrb[46].mxu1 %vm47_vm0, %v4240_v16 }
  0x61   :  { %530 = vmatprep.mubr.f32.mxu0 %v4097_v3  ;;  %691 = vmatprep.mubr.f32.mxu1 %v4097_v3 }
  0x62   :  { %2738 = vperm.xlu0 %4095, %v2735_v41  }
  0x64   :  { %3077 = vmatmul.mubr.msk.f32.gmra.mrb[48].mxu0 %vm47_vm0, %v4251_v17  ;;  %3093 = vmatmul.mubr.msk.f32.gmra.mrb[48].mxu1 %vm47_vm0, %v4251_v17 }
  0x65   :  { %536 = vmatprep.mubr.f32.mxu0 %v4097_v3  ;;  %697 = vmatprep.mubr.f32.mxu1 %v4097_v3 }
  0x68   :  { %3078 = vmatmul.mubr.msk.f32.gmra.mrb[50].mxu0 %vm47_vm0, %v4262_v18  ;;  %3094 = vmatmul.mubr.msk.f32.gmra.mrb[50].mxu1 %vm47_vm0, %v4262_v18 }
  0x69   :  { %542 = vmatprep.mubr.f32.mxu0 %v4097_v3  ;;  %703 = vmatprep.mubr.f32.mxu1 %v4097_v3 }
  0x6c   :  { %3079 = vmatmul.mubr.msk.f32.gmra.mrb[52].mxu0 %vm47_vm0, %v4273_v19  ;;  %3095 = vmatmul.mubr.msk.f32.gmra.mrb[52].mxu1 %vm47_vm0, %v4273_v19 }
  0x6d   :  { %548 = vmatprep.mubr.f32.mxu0 %v4097_v3  ;;  %709 = vmatprep.mubr.f32.mxu1 %v4097_v3 }
  0x70   :  { %3080 = vmatmul.mubr.msk.f32.gmra.mrb[54].mxu0 %vm47_vm0, %v4284_v20  ;;  %3096 = vmatmul.mubr.msk.f32.gmra.mrb[54].mxu1 %vm47_vm0, %v4284_v20 }
  0x71   :  { %554 = vmatprep.mubr.f32.mxu0 %v4097_v3  ;;  %715 = vmatprep.mubr.f32.mxu1 %v4097_v3 }
  0x74   :  { %3081 = vmatmul.mubr.msk.f32.gmra.mrb[56].mxu0 %vm47_vm0, %v4295_v21  ;;  %3097 = vmatmul.mubr.msk.f32.gmra.mrb[56].mxu1 %vm47_vm0, %v4295_v21 }
  0x75   :  { %560 = vmatprep.mubr.f32.mxu0 %v4097_v3  ;;  %721 = vmatprep.mubr.f32.mxu1 %v4097_v3 }
  0x78   :  { %3082 = vmatmul.mubr.msk.f32.gmra.mrb[58].mxu0 %vm47_vm0, %v4306_v22  ;;  %3098 = vmatmul.mubr.msk.f32.gmra.mrb[58].mxu1 %vm47_vm0, %v4306_v22 }
  0x79   :  { %566 = vmatprep.mubr.f32.mxu0 %v4097_v3  ;;  %727 = vmatprep.mubr.f32.mxu1 %v4097_v3 }
  0x7c   :  { %3083 = vmatmul.mubr.msk.f32.gmra.mrb[60].mxu0 %vm47_vm0, %v4317_v23  ;;  %3099 = vmatmul.mubr.msk.f32.gmra.mrb[60].mxu1 %vm47_vm0, %v4317_v23 }
  0x7d   :  { %572 = vmatprep.mubr.f32.mxu0 %v4097_v3  ;;  %733 = vmatprep.mubr.f32.mxu1 %v4097_v3 }
  0x80   :  { %3084 = vmatmul.mubr.msk.f32.gmra.mrb[62].mxu0 %vm47_vm0, %v4328_v24  ;;  %3100 = vmatmul.mubr.msk.f32.gmra.mrb[62].mxu1 %vm47_vm0, %v4328_v24  ;;  %v3252_v24 = vld [vmem:[%s5894_s3 + $0xb8] sm:$0xff] }
  0x81   :  { %1076 = vmatprep.mubr.f32.mxu0 %v4097_v3  ;;  %1237 = vmatprep.mubr.f32.mxu1 %v4097_v3 }
  0x82   :  { %1887 = vperm.xlu1 %4096, %v3252_v24  }
  0x86   :  { %1897 = vperm.xlu1 %4096, %v3254_v32  }
  0x8a   :  { %1907 = vperm.xlu1 %4096, %v3256_v40  }
  0x8e   :  { %1917 = vperm.xlu1 %4096, %v3258_v48   ;;  %v4641_v48 = vld [vmem:[%s5896_s2 + $0x8] sm:$0xff] }
  0x92   :  { %1927 = vperm.xlu1 %4096, %v3260_v55  }
  0xd7   :  { %v162_v43 = vpop.f32.mrb[0].mxu0  ;;  %v323_v44 = vpop.f32.mrb[0].mxu1 }
  0xd8   :  { %v164_v45 = vpop.f32.mrb[1].mxu0  ;;  %v325_v46 = vpop.f32.mrb[1].mxu1  ;;  %vm740_vm1 = vcmp.gt.f32.partialorder %v162_v43, 0.0  ;;  %vm742_vm2 = vcmp.gt.f32.partialorder %v323_v44, 0.0 }
  0xd9   :  { %vm741_vm8 = vcmp.gt.f32.partialorder %v164_v45, 0.0  ;;  %vm743_vm10 = vcmp.gt.f32.partialorder %v325_v46, 0.0 }
  0xdb   :  { %v168_v49 = vpop.f32.mrb[2].mxu0  ;;  %v329_v50 = vpop.f32.mrb[2].mxu1 }
  0xdc   :  { %vm748_vm3 = vcmp.gt.f32.partialorder %v168_v49, 0.0  ;;  %v3520_v51 = vpack.c.bf16 %v168_v49, %v162_v43  ;;  %vm750_vm4 = vcmp.gt.f32.partialorder %v329_v50, 0.0  ;;  %v3568_v52 = vpack.c.bf16 %v329_v50, %v323_v44  ;;  %v170_v53 = vpop.f32.mrb[3].mxu0  ;;  %v331_v54 = vpop.f32.mrb[3].mxu1 }
  0xdd   :  { %vm4495_vm5 = vmpackc.low %vm748_vm3, %vm740_vm1  ;;  %vm749_vm6 = vcmp.gt.f32.partialorder %v170_v53, 0.0  ;;  %v3517_v58 = vpack.c.bf16 %v170_v53, %v164_v45  ;;  %vm751_vm7 = vcmp.gt.f32.partialorder %v331_v54, 0.0  ;;  %v3565_v59 = vpack.c.bf16 %v331_v54, %v325_v46 }
  0xde   :  { %vm4500_vm9 = vmpackc.low %vm750_vm4, %vm742_vm2 }
  0xdf   :  { %vm4504_vm11 = vmpackc.low %vm749_vm6, %vm741_vm8  ;;  %v174_v62 = vpop.f32.mrb[4].mxu0  ;;  %v335_v63 = vpop.f32.mrb[4].mxu1 }
  0xe0   :  { %vm4508_vm12 = vmpackc.low %vm751_vm7, %vm743_vm10  ;;  %3519 = vmatprep.subr.msk.bf16.mxu0 %vm4504_vm11, %v3517_v58  ;;  %v176_v1 = vpop.f32.mrb[5].mxu0  ;;  %v337_v2 = vpop.f32.mrb[5].mxu1  ;;  %vm756_vm13 = vcmp.gt.f32.partialorder %v174_v62, 0.0  ;;  %vm758_vm14 = vcmp.gt.f32.partialorder %v335_v63, 0.0 }
  0xe1   :  { %3567 = vmatprep.subr.msk.bf16.mxu1 %vm4508_vm12, %v3565_v59  ;;  %3522 = vmatpush1.bf16.msk.msra.mxu0 %vm4495_vm5, %v3520_v51  ;;  %vm757_vm4 = vcmp.gt.f32.partialorder %v176_v1, 0.0  ;;  %vm759_vm7 = vcmp.gt.f32.partialorder %v337_v2, 0.0 }
  0xe2   :  { %3570 = vmatpush1.bf16.msk.msra.mxu1 %vm4500_vm9, %v3568_v52 }
  0xe3   :  { %v180_v6 = vpop.f32.mrb[6].mxu0  ;;  %v341_v7 = vpop.f32.mrb[6].mxu1 }
  0xe4   :  { %vm764_vm15 = vcmp.gt.f32.partialorder %v180_v6, 0.0  ;;  %v3526_v8 = vpack.c.bf16 %v180_v6, %v174_v62  ;;  %vm766_vm0 = vcmp.gt.f32.partialorder %v341_v7, 0.0  ;;  %v3574_v9 = vpack.c.bf16 %v341_v7, %v335_v63  ;;  %v182_v10 = vpop.f32.mrb[7].mxu0  ;;  %v343_v11 = vpop.f32.mrb[7].mxu1 }
  0xe5   :  { %vm4532_vm1 = vmpackc.low %vm764_vm15, %vm756_vm13  ;;  %vm765_vm2 = vcmp.gt.f32.partialorder %v182_v10, 0.0  ;;  %v3523_v15 = vpack.c.bf16 %v182_v10, %v176_v1  ;;  %vm767_vm3 = vcmp.gt.f32.partialorder %v343_v11, 0.0  ;;  %v3571_v16 = vpack.c.bf16 %v343_v11, %v337_v2 }
  0xe6   :  { %vm4537_vm6 = vmpackc.low %vm766_vm0, %vm758_vm14 }
  0xe7   :  { %vm4541_vm8 = vmpackc.low %vm765_vm2, %vm757_vm4  ;;  %v186_v19 = vpop.f32.mrb[8].mxu0  ;;  %v347_v20 = vpop.f32.mrb[8].mxu1 }
  0xe8   :  { %vm4545_vm10 = vmpackc.low %vm767_vm3, %vm759_vm7  ;;  %3525 = vmatprep.subr.msk.bf16.mxu0 %vm4541_vm8, %v3523_v15  ;;  %v188_v22 = vpop.f32.mrb[9].mxu0  ;;  %v349_v23 = vpop.f32.mrb[9].mxu1 }
  0xe9   :  { %3573 = vmatprep.subr.msk.bf16.mxu1 %vm4545_vm10, %v3571_v16  ;;  %3528 = vmatpush1.bf16.msk.msra.mxu0 %vm4532_vm1, %v3526_v8 }
  0xea   :  { %3576 = vmatpush1.bf16.msk.msra.mxu1 %vm4537_vm6, %v3574_v9 }
  0xeb   :  { %v192_v26 = vpop.f32.mrb[10].mxu0  ;;  %v353_v27 = vpop.f32.mrb[10].mxu1 }
  0xec   :  { %v3532_v28 = vpack.c.bf16 %v192_v26, %v186_v19  ;;  %v3580_v29 = vpack.c.bf16 %v353_v27, %v347_v20  ;;  %v194_v30 = vpop.f32.mrb[11].mxu0  ;;  %v355_v31 = vpop.f32.mrb[11].mxu1 }
  0xed   :  { %v3529_v33 = vpack.c.bf16 %v194_v30, %v188_v22  ;;  %v3577_v34 = vpack.c.bf16 %v355_v31, %v349_v23 }
  0xef   :  { %v198_v36 = vpop.f32.mrb[12].mxu0  ;;  %v359_v37 = vpop.f32.mrb[12].mxu1  ;;  %3531 = vmatprep.subr.msk.bf16.mxu0 %vm4504_vm11, %v3529_v33  ;;  %3579 = vmatprep.subr.msk.bf16.mxu1 %vm4508_vm12, %v3577_v34 }
  0xf0   :  { %v200_v38 = vpop.f32.mrb[13].mxu0  ;;  %v361_v39 = vpop.f32.mrb[13].mxu1  ;;  %3534 = vmatpush1.bf16.msk.msra.mxu0 %vm4495_vm5, %v3532_v28  ;;  %3582 = vmatpush1.bf16.msk.msra.mxu1 %vm4500_vm9, %v3580_v29 }
  0xf3   :  { %v204_v42 = vpop.f32.mrb[14].mxu0  ;;  %v365_v43 = vpop.f32.mrb[14].mxu1 }
  0xf4   :  { %v3538_v44 = vpack.c.bf16 %v204_v42, %v198_v36  ;;  %v3586_v45 = vpack.c.bf16 %v365_v43, %v359_v37  ;;  %v206_v46 = vpop.f32.mrb[15].mxu0  ;;  %v367_v47 = vpop.f32.mrb[15].mxu1 }
  0xf5   :  { %v3535_v49 = vpack.c.bf16 %v206_v46, %v200_v38  ;;  %v3583_v50 = vpack.c.bf16 %v367_v47, %v361_v39 }
  0xf7   :  { %v210_v51 = vpop.f32.mrb[16].mxu0  ;;  %v371_v52 = vpop.f32.mrb[16].mxu1  ;;  %3537 = vmatprep.subr.msk.bf16.mxu0 %vm4541_vm8, %v3535_v49  ;;  %3585 = vmatprep.subr.msk.bf16.mxu1 %vm4545_vm10, %v3583_v50  ;;  %v4859_v49 = vld [vmem:[%s5896_s2 + $0x78] sm:$0xff] }
  0xf8   :  { %v212_v53 = vpop.f32.mrb[17].mxu0  ;;  %v373_v54 = vpop.f32.mrb[17].mxu1  ;;  %3540 = vmatpush1.bf16.msk.msra.mxu0 %vm4532_vm1, %v3538_v44  ;;  %3588 = vmatpush1.bf16.msk.msra.mxu1 %vm4537_vm6, %v3586_v45 }
  0xfb   :  { %v216_v56 = vpop.f32.mrb[18].mxu0  ;;  %v377_v58 = vpop.f32.mrb[18].mxu1 }
  0xfc   :  { %v3544_v59 = vpack.c.bf16 %v216_v56, %v210_v51  ;;  %v3592_v62 = vpack.c.bf16 %v377_v58, %v371_v52  ;;  %v218_v63 = vpop.f32.mrb[19].mxu0  ;;  %v379_v1 = vpop.f32.mrb[19].mxu1 }
  0xfd   :  { %v3541_v2 = vpack.c.bf16 %v218_v63, %v212_v53  ;;  %v3589_v4 = vpack.c.bf16 %v379_v1, %v373_v54 }
  0xff   :  { %v222_v5 = vpop.f32.mrb[20].mxu0  ;;  %v383_v6 = vpop.f32.mrb[20].mxu1  ;;  %3543 = vmatprep.subr.msk.bf16.mxu0 %vm4504_vm11, %v3541_v2  ;;  %3591 = vmatprep.subr.msk.bf16.mxu1 %vm4508_vm12, %v3589_v4 }
 0x100   :  { %v224_v7 = vpop.f32.mrb[21].mxu0  ;;  %v385_v8 = vpop.f32.mrb[21].mxu1  ;;  %3546 = vmatpush1.bf16.msk.msra.mxu0 %vm4495_vm5, %v3544_v59  ;;  %3594 = vmatpush1.bf16.msk.msra.mxu1 %vm4500_vm9, %v3592_v62  ;;  %v4669_v62 = vld [vmem:[%s5896_s2 + $0x10] sm:$0xff] }
 0x103   :  { %v228_v9 = vpop.f32.mrb[22].mxu0  ;;  %v389_v10 = vpop.f32.mrb[22].mxu1 }
 0x104   :  { %v3550_v11 = vpack.c.bf16 %v228_v9, %v222_v5  ;;  %v3598_v12 = vpack.c.bf16 %v389_v10, %v383_v6  ;;  %v230_v13 = vpop.f32.mrb[23].mxu0  ;;  %v391_v15 = vpop.f32.mrb[23].mxu1 }
 0x105   :  { %v3547_v16 = vpack.c.bf16 %v230_v13, %v224_v7  ;;  %v3595_v19 = vpack.c.bf16 %v391_v15, %v385_v8  ;;  %v4685_v7 = vld [vmem:[%s5896_s2 + $0x18] sm:$0xff] }
 0x107   :  { %v234_v20 = vpop.f32.mrb[24].mxu0  ;;  %v395_v22 = vpop.f32.mrb[24].mxu1  ;;  %3549 = vmatprep.subr.msk.bf16.mxu0 %vm4541_vm8, %v3547_v16  ;;  %3597 = vmatprep.subr.msk.bf16.mxu1 %vm4545_vm10, %v3595_v19 }
 0x108   :  { %v236_v23 = vpop.f32.mrb[25].mxu0  ;;  %v397_v24 = vpop.f32.mrb[25].mxu1  ;;  %3552 = vmatpush1.bf16.msk.msra.mxu0 %vm4532_vm1, %v3550_v11  ;;  %3600 = vmatpush1.bf16.msk.msra.mxu1 %vm4537_vm6, %v3598_v12 }
 0x10b   :  { %v240_v25 = vpop.f32.mrb[26].mxu0  ;;  %v401_v26 = vpop.f32.mrb[26].mxu1 }
 0x10c   :  { %v3556_v27 = vpack.c.bf16 %v240_v25, %v234_v20  ;;  %v3604_v28 = vpack.c.bf16 %v401_v26, %v395_v22  ;;  %v242_v29 = vpop.f32.mrb[27].mxu0  ;;  %v403_v30 = vpop.f32.mrb[27].mxu1  ;;  %v4713_v22 = vld [vmem:[%s5896_s2 + $0x20] sm:$0xff] }
 0x10d   :  { %v3553_v31 = vpack.c.bf16 %v242_v29, %v236_v23  ;;  %v3601_v32 = vpack.c.bf16 %v403_v30, %v397_v24  ;;  %v4729_v29 = vld [vmem:[%s5896_s2 + $0x28] sm:$0xff] }
 0x10f   :  { %v246_v33 = vpop.f32.mrb[28].mxu0  ;;  %v407_v34 = vpop.f32.mrb[28].mxu1  ;;  %3555 = vmatprep.subr.msk.bf16.mxu0 %vm4504_vm11, %v3553_v31  ;;  %3603 = vmatprep.subr.msk.bf16.mxu1 %vm4508_vm12, %v3601_v32 }
 0x110   :  { %v248_v35 = vpop.f32.mrb[29].mxu0  ;;  %v409_v36 = vpop.f32.mrb[29].mxu1  ;;  %3558 = vmatpush1.bf16.msk.msra.mxu0 %vm4495_vm5, %v3556_v27  ;;  %3606 = vmatpush1.bf16.msk.msra.mxu1 %vm4500_vm9, %v3604_v28 }
 0x113   :  { %v252_v37 = vpop.f32.mrb[30].mxu0  ;;  %v413_v38 = vpop.f32.mrb[30].mxu1 }
 0x114   :  { %v3562_v39 = vpack.c.bf16 %v252_v37, %v246_v33  ;;  %v3610_v40 = vpack.c.bf16 %v413_v38, %v407_v34  ;;  %v254_v41 = vpop.f32.mrb[31].mxu0  ;;  %v415_v42 = vpop.f32.mrb[31].mxu1 }
 0x115   :  { %v3559_v43 = vpack.c.bf16 %v254_v41, %v248_v35  ;;  %v3607_v61 = vpack.c.bf16 %v415_v42, %v409_v36  ;;  %v4740_v36 = vld [vmem:[%s5896_s2 + $0x30] sm:$0xff] }
 0x117   :  { %v484_v44 = vpop.f32.mrb[32].mxu0  ;;  %v645_v45 = vpop.f32.mrb[32].mxu1  ;;  %3561 = vmatprep.subr.msk.bf16.mxu0 %vm4541_vm8, %v3559_v43  ;;  %3609 = vmatprep.subr.msk.bf16.mxu1 %vm4545_vm10, %v3607_v61  ;;  %v4755_v43 = vld [vmem:[%s5896_s2 + $0x38] sm:$0xff] }
 0x118   :  { %v486_v57 = vpop.f32.mrb[33].mxu0  ;;  %v647_v0 = vpop.f32.mrb[33].mxu1  ;;  %3564 = vmatpush1.bf16.msk.msra.mxu0 %vm4532_vm1, %v3562_v39  ;;  %3612 = vmatpush1.bf16.msk.msra.mxu1 %vm4537_vm6, %v3610_v40  ;;  %vm744_vm5 = vcmp.gt.f32.partialorder %v484_v44, 0.0  ;;  %vm746_vm9 = vcmp.gt.f32.partialorder %v645_v45, 0.0 }
 0x119   :  { %vm745_vm0 = vcmp.gt.f32.partialorder %v486_v57, 0.0  ;;  %vm747_vm2 = vcmp.gt.f32.partialorder %v647_v0, 0.0 }
 0x11b   :  { %v490_v18 = vpop.f32.mrb[34].mxu0  ;;  %v651_v46 = vpop.f32.mrb[34].mxu1  ;;  %1077 = vmatmul.mubr.f32.vlgmr.msra.gmra.mrb[64].mxu0 %v4632_v60  ;;  %1238 = vmatmul.mubr.f32.vlgmr.msra.gmra.mrb[64].mxu1 %v4632_v60 }
 0x11c   :  { %vm752_vm11 = vcmp.gt.f32.partialorder %v490_v18, 0.0  ;;  %v3616_v21 = vpack.c.bf16 %v490_v18, %v484_v44  ;;  %vm754_vm12 = vcmp.gt.f32.partialorder %v651_v46, 0.0  ;;  %v3664_v14 = vpack.c.bf16 %v651_v46, %v645_v45  ;;  %v492_v47 = vpop.f32.mrb[35].mxu0  ;;  %v653_v17 = vpop.f32.mrb[35].mxu1  ;;  %1082 = vmatprep.mubr.f32.mxu0 %v4097_v3  ;;  %1243 = vmatprep.mubr.f32.mxu1 %v4097_v3  ;;  %v4766_v46 = vld [vmem:[%s5896_s2 + $0x40] sm:$0xff] }
 0x11d   :  { %vm4644_vm13 = vmpackc.low %vm752_vm11, %vm744_vm5  ;;  %vm753_vm14 = vcmp.gt.f32.partialorder %v492_v47, 0.0  ;;  %v3613_v50 = vpack.c.bf16 %v492_v47, %v486_v57  ;;  %vm755_vm15 = vcmp.gt.f32.partialorder %v653_v17, 0.0  ;;  %v3661_v51 = vpack.c.bf16 %v653_v17, %v647_v0 }
 0x11e   :  { %vm4649_vm1 = vmpackc.low %vm754_vm12, %vm746_vm9 }
 0x11f   :  { %vm4653_vm3 = vmpackc.low %vm753_vm14, %vm745_vm0  ;;  %v496_v54 = vpop.f32.mrb[36].mxu0  ;;  %v657_v55 = vpop.f32.mrb[36].mxu1  ;;  %1083 = vmatmul.mubr.f32.gmra.mrb[66].mxu0 %v4641_v48  ;;  %1244 = vmatmul.mubr.f32.gmra.mrb[66].mxu1 %v4641_v48 }
 0x120   :  { %vm4659_vm4 = vmpackc.low %vm755_vm15, %vm747_vm2  ;;  %3615 = vmatprep.subr.msk.bf16.mxu0 %vm4653_vm3, %v3613_v50  ;;  %v498_v58 = vpop.f32.mrb[37].mxu0  ;;  %v659_v59 = vpop.f32.mrb[37].mxu1  ;;  %1088 = vmatprep.mubr.f32.mxu0 %v4097_v3  ;;  %vm760_vm6 = vcmp.gt.f32.partialorder %v496_v54, 0.0  ;;  %vm762_vm7 = vcmp.gt.f32.partialorder %v657_v55, 0.0 }
 0x121   :  { %3663 = vmatprep.subr.msk.bf16.mxu1 %vm4659_vm4, %v3661_v51  ;;  %3618 = vmatpush1.bf16.msk.msra.mxu0 %vm4644_vm13, %v3616_v21  ;;  %vm761_vm12 = vcmp.gt.f32.partialorder %v498_v58, 0.0  ;;  %vm763_vm15 = vcmp.gt.f32.partialorder %v659_v59, 0.0 }
 0x122   :  { %3666 = vmatpush1.bf16.msk.msra.mxu1 %vm4649_vm1, %v3664_v14  ;;  %1249 = vmatprep.mubr.f32.mxu1 %v4097_v3 }
 0x123   :  { %v502_v63 = vpop.f32.mrb[38].mxu0  ;;  %v663_v1 = vpop.f32.mrb[38].mxu1  ;;  %1089 = vmatmul.mubr.f32.gmra.mrb[68].mxu0 %v4669_v62  ;;  %1250 = vmatmul.mubr.f32.gmra.mrb[68].mxu1 %v4669_v62 }
 0x124   :  { %vm768_vm8 = vcmp.gt.f32.partialorder %v502_v63, 0.0  ;;  %v3622_v2 = vpack.c.bf16 %v502_v63, %v496_v54  ;;  %vm770_vm10 = vcmp.gt.f32.partialorder %v663_v1, 0.0  ;;  %v3670_v4 = vpack.c.bf16 %v663_v1, %v657_v55  ;;  %v504_v5 = vpop.f32.mrb[39].mxu0  ;;  %v665_v6 = vpop.f32.mrb[39].mxu1  ;;  %1094 = vmatprep.mubr.f32.mxu0 %v4097_v3  ;;  %1255 = vmatprep.mubr.f32.mxu1 %v4097_v3  ;;  %v4781_v54 = vld [vmem:[%s5896_s2 + $0x48] sm:$0xff] }
 0x125   :  { %vm4688_vm5 = vmpackc.low %vm768_vm8, %vm760_vm6  ;;  %vm769_vm9 = vcmp.gt.f32.partialorder %v504_v5, 0.0  ;;  %v3619_v9 = vpack.c.bf16 %v504_v5, %v498_v58  ;;  %vm771_vm11 = vcmp.gt.f32.partialorder %v665_v6, 0.0  ;;  %v3667_v10 = vpack.c.bf16 %v665_v6, %v659_v59 }
 0x126   :  { %vm4693_vm14 = vmpackc.low %vm770_vm10, %vm762_vm7 }
 0x127   :  { %vm4697_vm0 = vmpackc.low %vm769_vm9, %vm761_vm12  ;;  %v508_v13 = vpop.f32.mrb[40].mxu0  ;;  %v669_v15 = vpop.f32.mrb[40].mxu1  ;;  %1095 = vmatmul.mubr.f32.gmra.mrb[70].mxu0 %v4685_v7  ;;  %1256 = vmatmul.mubr.f32.gmra.mrb[70].mxu1 %v4685_v7 }
 0x128   :  { %vm4703_vm2 = vmpackc.low %vm771_vm11, %vm763_vm15  ;;  %3621 = vmatprep.subr.msk.bf16.mxu0 %vm4697_vm0, %v3619_v9  ;;  %v510_v19 = vpop.f32.mrb[41].mxu0  ;;  %v671_v20 = vpop.f32.mrb[41].mxu1  ;;  %1100 = vmatprep.mubr.f32.mxu0 %v4097_v3 }
 0x129   :  { %3669 = vmatprep.subr.msk.bf16.mxu1 %vm4703_vm2, %v3667_v10  ;;  %3624 = vmatpush1.bf16.msk.msra.mxu0 %vm4688_vm5, %v3622_v2 }
 0x12a   :  { %3672 = vmatpush1.bf16.msk.msra.mxu1 %vm4693_vm14, %v3670_v4  ;;  %1261 = vmatprep.mubr.f32.mxu1 %v4097_v3  ;;  %v4792_v4 = vld [vmem:[%s5896_s2 + $0x50] sm:$0xff] }
 0x12b   :  { %v514_v23 = vpop.f32.mrb[42].mxu0  ;;  %v675_v24 = vpop.f32.mrb[42].mxu1  ;;  %1101 = vmatmul.mubr.f32.gmra.mrb[72].mxu0 %v4713_v22  ;;  %1262 = vmatmul.mubr.f32.gmra.mrb[72].mxu1 %v4713_v22 }
 0x12c   :  { %v3628_v25 = vpack.c.bf16 %v514_v23, %v508_v13  ;;  %v3676_v26 = vpack.c.bf16 %v675_v24, %v669_v15  ;;  %v516_v27 = vpop.f32.mrb[43].mxu0  ;;  %v677_v28 = vpop.f32.mrb[43].mxu1  ;;  %1106 = vmatprep.mubr.f32.mxu0 %v4097_v3  ;;  %1267 = vmatprep.mubr.f32.mxu1 %v4097_v3 }
 0x12d   :  { %v3625_v30 = vpack.c.bf16 %v516_v27, %v510_v19  ;;  %v3673_v31 = vpack.c.bf16 %v677_v28, %v671_v20  ;;  %v4807_v19 = vld [vmem:[%s5896_s2 + $0x58] sm:$0xff]  ;;  %v4818_v28 = vld [vmem:[%s5896_s2 + $0x60] sm:$0xff] }
 0x12f   :  { %v520_v32 = vpop.f32.mrb[44].mxu0  ;;  %v681_v33 = vpop.f32.mrb[44].mxu1  ;;  %1107 = vmatmul.mubr.f32.gmra.mrb[74].mxu0 %v4729_v29  ;;  %1268 = vmatmul.mubr.f32.gmra.mrb[74].mxu1 %v4729_v29 }
 0x130   :  { %3627 = vmatprep.subr.msk.bf16.mxu0 %vm4653_vm3, %v3625_v30  ;;  %3675 = vmatprep.subr.msk.bf16.mxu1 %vm4659_vm4, %v3673_v31  ;;  %v522_v34 = vpop.f32.mrb[45].mxu0  ;;  %v683_v35 = vpop.f32.mrb[45].mxu1 }
 0x131   :  { %3630 = vmatpush1.bf16.msk.msra.mxu0 %vm4644_vm13, %v3628_v25  ;;  %3678 = vmatpush1.bf16.msk.msra.mxu1 %vm4649_vm1, %v3676_v26 }
 0x132   :  { %1112 = vmatprep.mubr.f32.mxu0 %v4097_v3  ;;  %1273 = vmatprep.mubr.f32.mxu1 %v4097_v3 }
 0x133   :  { %v526_v37 = vpop.f32.mrb[46].mxu0  ;;  %v687_v38 = vpop.f32.mrb[46].mxu1  ;;  %1113 = vmatmul.mubr.f32.gmra.mrb[76].mxu0 %v4740_v36  ;;  %1274 = vmatmul.mubr.f32.gmra.mrb[76].mxu1 %v4740_v36 }
 0x134   :  { %v3634_v39 = vpack.c.bf16 %v526_v37, %v520_v32  ;;  %v3682_v40 = vpack.c.bf16 %v687_v38, %v681_v33  ;;  %v528_v41 = vpop.f32.mrb[47].mxu0  ;;  %v689_v42 = vpop.f32.mrb[47].mxu1  ;;  %1118 = vmatprep.mubr.f32.mxu0 %v4097_v3  ;;  %1279 = vmatprep.mubr.f32.mxu1 %v4097_v3  ;;  %v4833_v37 = vld [vmem:[%s5896_s2 + $0x68] sm:$0xff] }
 0x135   :  { %v3631_v61 = vpack.c.bf16 %v528_v41, %v522_v34  ;;  %v3679_v44 = vpack.c.bf16 %v689_v42, %v683_v35 }
 0x137   :  { %v532_v45 = vpop.f32.mrb[48].mxu0  ;;  %v693_v57 = vpop.f32.mrb[48].mxu1  ;;  %1119 = vmatmul.mubr.f32.gmra.mrb[78].mxu0 %v4755_v43  ;;  %1280 = vmatmul.mubr.f32.gmra.mrb[78].mxu1 %v4755_v43 }
 0x138   :  { %3633 = vmatprep.subr.msk.bf16.mxu0 %vm4697_vm0, %v3631_v61  ;;  %3681 = vmatprep.subr.msk.bf16.mxu1 %vm4703_vm2, %v3679_v44  ;;  %v534_v0 = vpop.f32.mrb[49].mxu0  ;;  %v695_v18 = vpop.f32.mrb[49].mxu1  ;;  %v4844_v44 = vld [vmem:[%s5896_s2 + $0x70] sm:$0xff] }
 0x139   :  { %3636 = vmatpush1.bf16.msk.msra.mxu0 %vm4688_vm5, %v3634_v39  ;;  %3684 = vmatpush1.bf16.msk.msra.mxu1 %vm4693_vm14, %v3682_v40 }
 0x13a   :  { %1124 = vmatprep.mubr.f32.mxu0 %v4097_v3  ;;  %1285 = vmatprep.mubr.f32.mxu1 %v4097_v3 }
 0x13b   :  { %v538_v21 = vpop.f32.mrb[50].mxu0  ;;  %v699_v14 = vpop.f32.mrb[50].mxu1  ;;  %1125 = vmatmul.mubr.f32.gmra.mrb[80].mxu0 %v4766_v46  ;;  %1286 = vmatmul.mubr.f32.gmra.mrb[80].mxu1 %v4766_v46 }
 0x13c   :  { %v3640_v47 = vpack.c.bf16 %v538_v21, %v532_v45  ;;  %v3688_v17 = vpack.c.bf16 %v699_v14, %v693_v57  ;;  %v540_v50 = vpop.f32.mrb[51].mxu0  ;;  %v701_v51 = vpop.f32.mrb[51].mxu1  ;;  %1130 = vmatprep.mubr.f32.mxu0 %v4097_v3  ;;  %1291 = vmatprep.mubr.f32.mxu1 %v4097_v3 }
 0x13d   :  { %v3637_v55 = vpack.c.bf16 %v540_v50, %v534_v0  ;;  %v3685_v58 = vpack.c.bf16 %v701_v51, %v695_v18 }
 0x13f   :  { %v544_v59 = vpop.f32.mrb[52].mxu0  ;;  %v705_v63 = vpop.f32.mrb[52].mxu1  ;;  %1131 = vmatmul.mubr.f32.gmra.mrb[82].mxu0 %v4781_v54  ;;  %1292 = vmatmul.mubr.f32.gmra.mrb[82].mxu1 %v4781_v54 }
 0x140   :  { %3639 = vmatprep.subr.msk.bf16.mxu0 %vm4653_vm3, %v3637_v55  ;;  %3687 = vmatprep.subr.msk.bf16.mxu1 %vm4659_vm4, %v3685_v58  ;;  %v546_v1 = vpop.f32.mrb[53].mxu0  ;;  %v707_v2 = vpop.f32.mrb[53].mxu1 }
 0x141   :  { %3642 = vmatpush1.bf16.msk.msra.mxu0 %vm4644_vm13, %v3640_v47  ;;  %3690 = vmatpush1.bf16.msk.msra.mxu1 %vm4649_vm1, %v3688_v17 }
 0x142   :  { %1136 = vmatprep.mubr.f32.mxu0 %v4097_v3  ;;  %1297 = vmatprep.mubr.f32.mxu1 %v4097_v3 }
 0x143   :  { %v550_v5 = vpop.f32.mrb[54].mxu0  ;;  %v711_v6 = vpop.f32.mrb[54].mxu1  ;;  %1137 = vmatmul.mubr.f32.gmra.mrb[84].mxu0 %v4792_v4  ;;  %1298 = vmatmul.mubr.f32.gmra.mrb[84].mxu1 %v4792_v4 }
 0x144   :  { %v3646_v9 = vpack.c.bf16 %v550_v5, %v544_v59  ;;  %v3694_v10 = vpack.c.bf16 %v711_v6, %v705_v63  ;;  %v552_v13 = vpop.f32.mrb[55].mxu0  ;;  %v713_v15 = vpop.f32.mrb[55].mxu1  ;;  %1142 = vmatprep.mubr.f32.mxu0 %v4097_v3  ;;  %1303 = vmatprep.mubr.f32.mxu1 %v4097_v3 }
 0x145   :  { %v3643_v20 = vpack.c.bf16 %v552_v13, %v546_v1  ;;  %v3691_v23 = vpack.c.bf16 %v713_v15, %v707_v2 }
 0x147   :  { %v556_v24 = vpop.f32.mrb[56].mxu0  ;;  %v717_v25 = vpop.f32.mrb[56].mxu1  ;;  %1143 = vmatmul.mubr.f32.gmra.mrb[86].mxu0 %v4807_v19  ;;  %1304 = vmatmul.mubr.f32.gmra.mrb[86].mxu1 %v4807_v19 }
 0x148   :  { %3645 = vmatprep.subr.msk.bf16.mxu0 %vm4697_vm0, %v3643_v20  ;;  %3693 = vmatprep.subr.msk.bf16.mxu1 %vm4703_vm2, %v3691_v23  ;;  %v558_v26 = vpop.f32.mrb[57].mxu0  ;;  %v719_v27 = vpop.f32.mrb[57].mxu1 }
 0x149   :  { %3648 = vmatpush1.bf16.msk.msra.mxu0 %vm4688_vm5, %v3646_v9  ;;  %3696 = vmatpush1.bf16.msk.msra.mxu1 %vm4693_vm14, %v3694_v10 }
 0x14a   :  { %1148 = vmatprep.mubr.f32.mxu0 %v4097_v3  ;;  %1309 = vmatprep.mubr.f32.mxu1 %v4097_v3 }
 0x14b   :  { %v562_v30 = vpop.f32.mrb[58].mxu0  ;;  %v723_v31 = vpop.f32.mrb[58].mxu1  ;;  %1149 = vmatmul.mubr.f32.gmra.mrb[88].mxu0 %v4818_v28  ;;  %1310 = vmatmul.mubr.f32.gmra.mrb[88].mxu1 %v4818_v28 }
 0x14c   :  { %v3652_v32 = vpack.c.bf16 %v562_v30, %v556_v24  ;;  %v3700_v33 = vpack.c.bf16 %v723_v31, %v717_v25  ;;  %v564_v34 = vpop.f32.mrb[59].mxu0  ;;  %v725_v35 = vpop.f32.mrb[59].mxu1  ;;  %1154 = vmatprep.mubr.f32.mxu0 %v4097_v3  ;;  %1315 = vmatprep.mubr.f32.mxu1 %v4097_v3 }
 0x14d   :  { %v3649_v38 = vpack.c.bf16 %v564_v34, %v558_v26  ;;  %v3697_v39 = vpack.c.bf16 %v725_v35, %v719_v27 }
 0x14f   :  { %v568_v40 = vpop.f32.mrb[60].mxu0  ;;  %v729_v41 = vpop.f32.mrb[60].mxu1  ;;  %1155 = vmatmul.mubr.f32.gmra.mrb[90].mxu0 %v4833_v37  ;;  %1316 = vmatmul.mubr.f32.gmra.mrb[90].mxu1 %v4833_v37 }
 0x150   :  { %3651 = vmatprep.subr.msk.bf16.mxu0 %vm4653_vm3, %v3649_v38  ;;  %3699 = vmatprep.subr.msk.bf16.mxu1 %vm4659_vm4, %v3697_v39  ;;  %v570_v42 = vpop.f32.mrb[61].mxu0  ;;  %v731_v61 = vpop.f32.mrb[61].mxu1 }
 0x151   :  { %3654 = vmatpush1.bf16.msk.msra.mxu0 %vm4644_vm13, %v3652_v32  ;;  %3702 = vmatpush1.bf16.msk.msra.mxu1 %vm4649_vm1, %v3700_v33 }
 0x152   :  { %1160 = vmatprep.mubr.f32.mxu0 %v4097_v3  ;;  %1321 = vmatprep.mubr.f32.mxu1 %v4097_v3 }
 0x153   :  { %v574_v53 = vpop.f32.mrb[62].mxu0  ;;  %v735_v56 = vpop.f32.mrb[62].mxu1  ;;  %1161 = vmatmul.mubr.f32.gmra.mrb[92].mxu0 %v4844_v44  ;;  %1322 = vmatmul.mubr.f32.gmra.mrb[92].mxu1 %v4844_v44 }
 0x154   :  { %v3658_v45 = vpack.c.bf16 %v574_v53, %v568_v40  ;;  %v3706_v57 = vpack.c.bf16 %v735_v56, %v729_v41  ;;  %v576_v0 = vpop.f32.mrb[63].mxu0  ;;  %v737_v18 = vpop.f32.mrb[63].mxu1  ;;  %1166 = vmatprep.mubr.f32.mxu0 %v4097_v3  ;;  %1327 = vmatprep.mubr.f32.mxu1 %v4097_v3 }
 0x155   :  { %v3655_v52 = vpack.c.bf16 %v576_v0, %v570_v42  ;;  %v3703_v21 = vpack.c.bf16 %v737_v18, %v731_v61 }
 0x157   :  { %1167 = vmatmul.mubr.f32.gmra.mrb[94].mxu0 %v4859_v49  ;;  %1328 = vmatmul.mubr.f32.gmra.mrb[94].mxu1 %v4859_v49 }
 0x158   :  { %3657 = vmatprep.subr.msk.bf16.mxu0 %vm4697_vm0, %v3655_v52  ;;  %3705 = vmatprep.subr.msk.bf16.mxu1 %vm4703_vm2, %v3703_v21 }
 0x159   :  { %3660 = vmatpush1.bf16.msk.msra.mxu0 %vm4688_vm5, %v3658_v45  ;;  %3708 = vmatpush1.bf16.msk.msra.mxu1 %vm4693_vm14, %v3706_v57 }
 0x15a   :  { %1398 = vmatprep.mubr.f32.mxu0 %v4097_v3  ;;  %1559 = vmatprep.mubr.f32.mxu1 %v4097_v3 }
 0x15c   :  { %1399 = vmatmul.mubr.f32.vlgmr.msra.gmra.mrb[96].mxu0 %v4632_v60  ;;  %1560 = vmatmul.mubr.f32.vlgmr.msra.gmra.mrb[96].mxu1 %v4632_v60  ;;  %v4937_v60 = vpop.permute.xlu0 %934 }
 0x15d   :  { %1404 = vmatprep.mubr.f32.mxu0 %v4097_v3  ;;  %1565 = vmatprep.mubr.f32.mxu1 %v4097_v3 }
 0x160   :  { %1405 = vmatmul.mubr.f32.gmra.mrb[98].mxu0 %v4641_v48  ;;  %1566 = vmatmul.mubr.f32.gmra.mrb[98].mxu1 %v4641_v48  ;;  %v4941_v16 = vpop.permute.xlu0 %939 }
 0x161   :  { %1410 = vmatprep.mubr.f32.mxu0 %v4097_v3  ;;  %1571 = vmatprep.mubr.f32.mxu1 %v4097_v3 }
 0x164   :  { %1411 = vmatmul.mubr.f32.gmra.mrb[100].mxu0 %v4669_v62  ;;  %1572 = vmatmul.mubr.f32.gmra.mrb[100].mxu1 %v4669_v62  ;;  %v4999_v56 = vpop.permute.xlu0 %954 }
 0x165   :  { %1416 = vmatprep.mubr.f32.mxu0 %v4097_v3  ;;  %1577 = vmatprep.mubr.f32.mxu1 %v4097_v3 }
 0x168   :  { %1417 = vmatmul.mubr.f32.gmra.mrb[102].mxu0 %v4685_v7  ;;  %1578 = vmatmul.mubr.f32.gmra.mrb[102].mxu1 %v4685_v7 }
 0x169   :  { %1422 = vmatprep.mubr.f32.mxu0 %v4097_v3  ;;  %1583 = vmatprep.mubr.f32.mxu1 %v4097_v3 }
 0x16c   :  { %1423 = vmatmul.mubr.f32.gmra.mrb[104].mxu0 %v4713_v22  ;;  %1584 = vmatmul.mubr.f32.gmra.mrb[104].mxu1 %v4713_v22  ;;  %v4943_v22 = vpop.permute.xlu1 %944 }
 0x16d   :  { %1428 = vmatprep.mubr.f32.mxu0 %v4097_v3  ;;  %1589 = vmatprep.mubr.f32.mxu1 %v4097_v3 }
 0x170   :  { %1429 = vmatmul.mubr.f32.gmra.mrb[106].mxu0 %v4729_v29  ;;  %1590 = vmatmul.mubr.f32.gmra.mrb[106].mxu1 %v4729_v29 }
 0x171   :  { %1434 = vmatprep.mubr.f32.mxu0 %v4097_v3  ;;  %1595 = vmatprep.mubr.f32.mxu1 %v4097_v3 }
 0x174   :  { %1435 = vmatmul.mubr.f32.gmra.mrb[108].mxu0 %v4740_v36  ;;  %1596 = vmatmul.mubr.f32.gmra.mrb[108].mxu1 %v4740_v36 }
 0x175   :  { %1440 = vmatprep.mubr.f32.mxu0 %v4097_v3  ;;  %1601 = vmatprep.mubr.f32.mxu1 %v4097_v3 }
 0x178   :  { %1441 = vmatmul.mubr.f32.gmra.mrb[110].mxu0 %v4755_v43  ;;  %1602 = vmatmul.mubr.f32.gmra.mrb[110].mxu1 %v4755_v43 }
 0x179   :  { %1446 = vmatprep.mubr.f32.mxu0 %v4097_v3  ;;  %1607 = vmatprep.mubr.f32.mxu1 %v4097_v3 }
 0x17c   :  { %1447 = vmatmul.mubr.f32.gmra.mrb[112].mxu0 %v4766_v46  ;;  %1608 = vmatmul.mubr.f32.gmra.mrb[112].mxu1 %v4766_v46 }
 0x17d   :  { %1452 = vmatprep.mubr.f32.mxu0 %v4097_v3  ;;  %1613 = vmatprep.mubr.f32.mxu1 %v4097_v3 }
 0x180   :  { %1453 = vmatmul.mubr.f32.gmra.mrb[114].mxu0 %v4781_v54  ;;  %1614 = vmatmul.mubr.f32.gmra.mrb[114].mxu1 %v4781_v54 }
 0x181   :  { %1458 = vmatprep.mubr.f32.mxu0 %v4097_v3  ;;  %1619 = vmatprep.mubr.f32.mxu1 %v4097_v3 }
 0x184   :  { %1459 = vmatmul.mubr.f32.gmra.mrb[116].mxu0 %v4792_v4  ;;  %1620 = vmatmul.mubr.f32.gmra.mrb[116].mxu1 %v4792_v4 }
 0x185   :  { %1464 = vmatprep.mubr.f32.mxu0 %v4097_v3  ;;  %1625 = vmatprep.mubr.f32.mxu1 %v4097_v3 }
 0x188   :  { %1465 = vmatmul.mubr.f32.gmra.mrb[118].mxu0 %v4807_v19  ;;  %1626 = vmatmul.mubr.f32.gmra.mrb[118].mxu1 %v4807_v19  ;;  %v4966_v19 = vpop.permute.xlu1 %949 }
 0x189   :  { %1470 = vmatprep.mubr.f32.mxu0 %v4097_v3  ;;  %1631 = vmatprep.mubr.f32.mxu1 %v4097_v3 }
 0x18c   :  { %1471 = vmatmul.mubr.f32.gmra.mrb[120].mxu0 %v4818_v28  ;;  %1632 = vmatmul.mubr.f32.gmra.mrb[120].mxu1 %v4818_v28  ;;  %v5001_v45 = vpop.permute.xlu1 %959 }
 0x18d   :  { %1476 = vmatprep.mubr.f32.mxu0 %v4097_v3  ;;  %1637 = vmatprep.mubr.f32.mxu1 %v4097_v3 }
 0x190   :  { %1477 = vmatmul.mubr.f32.gmra.mrb[122].mxu0 %v4833_v37  ;;  %1638 = vmatmul.mubr.f32.gmra.mrb[122].mxu1 %v4833_v37 }
 0x191   :  { %1482 = vmatprep.mubr.f32.mxu0 %v4097_v3  ;;  %1643 = vmatprep.mubr.f32.mxu1 %v4097_v3 }
 0x194   :  { %1483 = vmatmul.mubr.f32.gmra.mrb[124].mxu0 %v4844_v44  ;;  %1644 = vmatmul.mubr.f32.gmra.mrb[124].mxu1 %v4844_v44 }
 0x195   :  { %1488 = vmatprep.mubr.f32.mxu0 %v4097_v3  ;;  %1649 = vmatprep.mubr.f32.mxu1 %v4097_v3 }
 0x198   :  { %1489 = vmatmul.mubr.f32.gmra.mrb[126].mxu0 %v4859_v49  ;;  %1650 = vmatmul.mubr.f32.gmra.mrb[126].mxu1 %v4859_v49 }
 0x199   :  { %1994 = vmatprep.mubr.f32.mxu0 %v4097_v3  ;;  %2155 = vmatprep.mubr.f32.mxu1 %v4097_v3 }
 0x1ee   :  { %v1078_v48 = vpop.f32.mrb[64].mxu0  ;;  %v1239_v62 = vpop.f32.mrb[64].mxu1 }
 0x1ef   :  { %v1080_v7 = vpop.f32.mrb[65].mxu0  ;;  %v1241_v8 = vpop.f32.mrb[65].mxu1  ;;  %v1079_v11 = vadd.f32 %v1078_v48, %v4937_v60  ;;  %v1240_v12 = vadd.f32 %v1239_v62, %v4937_v60 }
 0x1f0   :  { %v1081_v43 = vadd.f32 %v1080_v7, %v4937_v60  ;;  %v1242_v46 = vadd.f32 %v1241_v8, %v4937_v60 }
 0x1f1   :  { %vm1656_vm13 = vcmp.gt.f32.partialorder %v1079_v11, 0.0  ;;  %vm1658_vm1 = vcmp.gt.f32.partialorder %v1240_v12, 0.0 }
 0x1f2   :  { %v1084_v29 = vpop.f32.mrb[66].mxu0  ;;  %v1245_v36 = vpop.f32.mrb[66].mxu1  ;;  %vm1657_vm10 = vcmp.gt.f32.partialorder %v1081_v43, 0.0  ;;  %vm1659_vm9 = vcmp.gt.f32.partialorder %v1242_v46, 0.0 }
 0x1f3   :  { %v1085_v14 = vadd.f32 %v1084_v29, %v4941_v16  ;;  %v1246_v47 = vadd.f32 %v1245_v36, %v4941_v16  ;;  %v1086_v17 = vpop.f32.mrb[67].mxu0  ;;  %v1247_v50 = vpop.f32.mrb[67].mxu1 }
 0x1f4   :  { %v1087_v51 = vadd.f32 %v1086_v17, %v4941_v16  ;;  %v1248_v54 = vadd.f32 %v1247_v50, %v4941_v16 }
 0x1f5   :  { %vm1664_vm3 = vcmp.gt.f32.partialorder %v1085_v14, 0.0  ;;  %v3712_v55 = vpack.c.bf16 %v1085_v14, %v1079_v11  ;;  %vm1666_vm4 = vcmp.gt.f32.partialorder %v1246_v47, 0.0  ;;  %v3760_v58 = vpack.c.bf16 %v1246_v47, %v1240_v12 }
 0x1f6   :  { %vm4951_vm6 = vmpackc.low %vm1664_vm3, %vm1656_vm13  ;;  %vm1665_vm7 = vcmp.gt.f32.partialorder %v1087_v51, 0.0  ;;  %v3709_v63 = vpack.c.bf16 %v1087_v51, %v1081_v43  ;;  %vm1667_vm8 = vcmp.gt.f32.partialorder %v1248_v54, 0.0  ;;  %v3757_v1 = vpack.c.bf16 %v1248_v54, %v1242_v46  ;;  %v1090_v2 = vpop.f32.mrb[68].mxu0  ;;  %v1251_v4 = vpop.f32.mrb[68].mxu1 }
 0x1f7   :  { %vm4956_vm5 = vmpackc.low %vm1666_vm4, %vm1658_vm1  ;;  %v1092_v6 = vpop.f32.mrb[69].mxu0  ;;  %v1253_v9 = vpop.f32.mrb[69].mxu1  ;;  %v1091_v10 = vadd.f32 %v1090_v2, %v4943_v22  ;;  %v1252_v13 = vadd.f32 %v1251_v4, %v4943_v22 }
 0x1f8   :  { %vm4962_vm11 = vmpackc.low %vm1665_vm7, %vm1657_vm10  ;;  %v1093_v25 = vadd.f32 %v1092_v6, %v4943_v22  ;;  %v1254_v26 = vadd.f32 %v1253_v9, %v4943_v22  ;;  %v5027_v54 = vpop.permute.xlu0 %964 }
 0x1f9   :  { %3711 = vmatprep.subr.msk.bf16.mxu0 %vm4962_vm11, %v3709_v63  ;;  %vm4970_vm12 = vmpackc.low %vm1667_vm8, %vm1659_vm9  ;;  %vm1672_vm14 = vcmp.gt.f32.partialorder %v1091_v10, 0.0  ;;  %vm1674_vm15 = vcmp.gt.f32.partialorder %v1252_v13, 0.0 }
 0x1fa   :  { %3759 = vmatprep.subr.msk.bf16.mxu1 %vm4970_vm12, %v3757_v1  ;;  %3714 = vmatpush1.bf16.msk.msra.mxu0 %vm4951_vm6, %v3712_v55  ;;  %v1096_v23 = vpop.f32.mrb[70].mxu0  ;;  %v1257_v24 = vpop.f32.mrb[70].mxu1  ;;  %vm1673_vm4 = vcmp.gt.f32.partialorder %v1093_v25, 0.0  ;;  %vm1675_vm8 = vcmp.gt.f32.partialorder %v1254_v26, 0.0 }
 0x1fb   :  { %3762 = vmatpush1.bf16.msk.msra.mxu1 %vm4956_vm5, %v3760_v58  ;;  %v1097_v27 = vadd.f32 %v1096_v23, %v4966_v19  ;;  %v1258_v28 = vadd.f32 %v1257_v24, %v4966_v19  ;;  %v1098_v30 = vpop.f32.mrb[71].mxu0  ;;  %v1259_v31 = vpop.f32.mrb[71].mxu1 }
 0x1fc   :  { %v1099_v32 = vadd.f32 %v1098_v30, %v4966_v19  ;;  %v1260_v33 = vadd.f32 %v1259_v31, %v4966_v19  ;;  %v5029_v55 = vpop.permute.xlu1 %969 }
 0x1fd   :  { %vm1680_vm0 = vcmp.gt.f32.partialorder %v1097_v27, 0.0  ;;  %v3718_v34 = vpack.c.bf16 %v1097_v27, %v1091_v10  ;;  %vm1682_vm2 = vcmp.gt.f32.partialorder %v1258_v28, 0.0  ;;  %v3766_v35 = vpack.c.bf16 %v1258_v28, %v1252_v13 }
 0x1fe   :  { %vm4986_vm13 = vmpackc.low %vm1680_vm0, %vm1672_vm14  ;;  %vm1681_vm1 = vcmp.gt.f32.partialorder %v1099_v32, 0.0  ;;  %v3715_v38 = vpack.c.bf16 %v1099_v32, %v1093_v25  ;;  %vm1683_vm3 = vcmp.gt.f32.partialorder %v1260_v33, 0.0  ;;  %v3763_v39 = vpack.c.bf16 %v1260_v33, %v1254_v26  ;;  %v1102_v40 = vpop.f32.mrb[72].mxu0  ;;  %v1263_v41 = vpop.f32.mrb[72].mxu1 }
 0x1ff   :  { %vm4991_vm7 = vmpackc.low %vm1682_vm2, %vm1674_vm15  ;;  %v1104_v61 = vpop.f32.mrb[73].mxu0  ;;  %v1265_v44 = vpop.f32.mrb[73].mxu1  ;;  %v1103_v49 = vadd.f32 %v1102_v40, %v4999_v56  ;;  %v1264_v52 = vadd.f32 %v1263_v41, %v4999_v56 }
 0x200   :  { %vm4995_vm10 = vmpackc.low %vm1681_vm1, %vm1673_vm4  ;;  %v1105_v8 = vadd.f32 %v1104_v61, %v4999_v56  ;;  %v1266_v11 = vadd.f32 %v1265_v44, %v4999_v56 }
 0x201   :  { %3717 = vmatprep.subr.msk.bf16.mxu0 %vm4995_vm10, %v3715_v38  ;;  %vm5005_vm9 = vmpackc.low %vm1683_vm3, %vm1675_vm8  ;;  %v5049_v38 = vpop.permute.xlu1 %979 }
 0x202   :  { %3765 = vmatprep.subr.msk.bf16.mxu1 %vm5005_vm9, %v3763_v39  ;;  %3720 = vmatpush1.bf16.msk.msra.mxu0 %vm4986_vm13, %v3718_v34  ;;  %v1108_v0 = vpop.f32.mrb[74].mxu0  ;;  %v1269_v18 = vpop.f32.mrb[74].mxu1 }
 0x203   :  { %3768 = vmatpush1.bf16.msk.msra.mxu1 %vm4991_vm7, %v3766_v35  ;;  %v1109_v21 = vadd.f32 %v1108_v0, %v5001_v45  ;;  %v1270_v48 = vadd.f32 %v1269_v18, %v5001_v45  ;;  %v1110_v62 = vpop.f32.mrb[75].mxu0  ;;  %v1271_v7 = vpop.f32.mrb[75].mxu1 }
 0x204   :  { %v1111_v12 = vadd.f32 %v1110_v62, %v5001_v45  ;;  %v1272_v29 = vadd.f32 %v1271_v7, %v5001_v45  ;;  %v5047_v35 = vpop.permute.xlu0 %974 }
 0x205   :  { %v3724_v36 = vpack.c.bf16 %v1109_v21, %v1103_v49  ;;  %v3772_v43 = vpack.c.bf16 %v1270_v48, %v1264_v52 }
 0x206   :  { %v3721_v46 = vpack.c.bf16 %v1111_v12, %v1105_v8  ;;  %v3769_v14 = vpack.c.bf16 %v1272_v29, %v1266_v11  ;;  %v1114_v47 = vpop.f32.mrb[76].mxu0  ;;  %v1275_v17 = vpop.f32.mrb[76].mxu1 }
 0x207   :  { %v1116_v50 = vpop.f32.mrb[77].mxu0  ;;  %v1277_v51 = vpop.f32.mrb[77].mxu1  ;;  %v1115_v1 = vadd.f32 %v1114_v47, %v5027_v54  ;;  %v1276_v2 = vadd.f32 %v1275_v17, %v5027_v54 }
 0x208   :  { %3723 = vmatprep.subr.msk.bf16.mxu0 %vm4962_vm11, %v3721_v46  ;;  %3771 = vmatprep.subr.msk.bf16.mxu1 %vm4970_vm12, %v3769_v14  ;;  %v1117_v13 = vadd.f32 %v1116_v50, %v5027_v54  ;;  %v1278_v23 = vadd.f32 %v1277_v51, %v5027_v54  ;;  %v5067_v14 = vpop.permute.xlu0 %984  ;;  %v5069_v47 = vpop.permute.xlu1 %989 }
 0x209   :  { %3726 = vmatpush1.bf16.msk.msra.mxu0 %vm4951_vm6, %v3724_v36  ;;  %3774 = vmatpush1.bf16.msk.msra.mxu1 %vm4956_vm5, %v3772_v43 }
 0x20a   :  { %v1120_v58 = vpop.f32.mrb[78].mxu0  ;;  %v1281_v63 = vpop.f32.mrb[78].mxu1 }
 0x20b   :  { %v1121_v4 = vadd.f32 %v1120_v58, %v5029_v55  ;;  %v1282_v6 = vadd.f32 %v1281_v63, %v5029_v55  ;;  %v1122_v9 = vpop.f32.mrb[79].mxu0  ;;  %v1283_v10 = vpop.f32.mrb[79].mxu1 }
 0x20c   :  { %v1123_v24 = vadd.f32 %v1122_v9, %v5029_v55  ;;  %v1284_v25 = vadd.f32 %v1283_v10, %v5029_v55 }
 0x20d   :  { %v3730_v26 = vpack.c.bf16 %v1121_v4, %v1115_v1  ;;  %v3778_v27 = vpack.c.bf16 %v1282_v6, %v1276_v2 }
 0x20e   :  { %v3727_v28 = vpack.c.bf16 %v1123_v24, %v1117_v13  ;;  %v3775_v30 = vpack.c.bf16 %v1284_v25, %v1278_v23  ;;  %v1126_v31 = vpop.f32.mrb[80].mxu0  ;;  %v1287_v32 = vpop.f32.mrb[80].mxu1 }
 0x20f   :  { %v1128_v33 = vpop.f32.mrb[81].mxu0  ;;  %v1289_v34 = vpop.f32.mrb[81].mxu1  ;;  %v1127_v41 = vadd.f32 %v1126_v31, %v5047_v35  ;;  %v1288_v61 = vadd.f32 %v1287_v32, %v5047_v35 }
 0x210   :  { %3729 = vmatprep.subr.msk.bf16.mxu0 %vm4995_vm10, %v3727_v28  ;;  %3777 = vmatprep.subr.msk.bf16.mxu1 %vm5005_vm9, %v3775_v30  ;;  %v1129_v52 = vadd.f32 %v1128_v33, %v5047_v35  ;;  %v1290_v21 = vadd.f32 %v1289_v34, %v5047_v35  ;;  %v5087_v32 = vpop.permute.xlu0 %994  ;;  %v5089_v33 = vpop.permute.xlu1 %999 }
 0x211   :  { %3732 = vmatpush1.bf16.msk.msra.mxu0 %vm4986_vm13, %v3730_v26  ;;  %3780 = vmatpush1.bf16.msk.msra.mxu1 %vm4991_vm7, %v3778_v27 }
 0x212   :  { %v1132_v39 = vpop.f32.mrb[82].mxu0  ;;  %v1293_v40 = vpop.f32.mrb[82].mxu1 }
 0x213   :  { %v1133_v44 = vadd.f32 %v1132_v39, %v5049_v38  ;;  %v1294_v0 = vadd.f32 %v1293_v40, %v5049_v38  ;;  %v1134_v18 = vpop.f32.mrb[83].mxu0  ;;  %v1295_v49 = vpop.f32.mrb[83].mxu1 }
 0x214   :  { %v1135_v48 = vadd.f32 %v1134_v18, %v5049_v38  ;;  %v1296_v62 = vadd.f32 %v1295_v49, %v5049_v38 }
 0x215   :  { %v3736_v7 = vpack.c.bf16 %v1133_v44, %v1127_v41  ;;  %v3784_v8 = vpack.c.bf16 %v1294_v0, %v1288_v61 }
 0x216   :  { %v3733_v11 = vpack.c.bf16 %v1135_v48, %v1129_v52  ;;  %v3781_v12 = vpack.c.bf16 %v1296_v62, %v1290_v21  ;;  %v1138_v29 = vpop.f32.mrb[84].mxu0  ;;  %v1299_v36 = vpop.f32.mrb[84].mxu1 }
 0x217   :  { %v1140_v43 = vpop.f32.mrb[85].mxu0  ;;  %v1301_v46 = vpop.f32.mrb[85].mxu1  ;;  %v1139_v51 = vadd.f32 %v1138_v29, %v5067_v14  ;;  %v1300_v58 = vadd.f32 %v1299_v36, %v5067_v14 }
 0x218   :  { %3735 = vmatprep.subr.msk.bf16.mxu0 %vm4962_vm11, %v3733_v11  ;;  %3783 = vmatprep.subr.msk.bf16.mxu1 %vm4970_vm12, %v3781_v12  ;;  %v1141_v6 = vadd.f32 %v1140_v43, %v5067_v14  ;;  %v1302_v9 = vadd.f32 %v1301_v46, %v5067_v14  ;;  %v5107_v46 = vpop.permute.xlu0 %1004 }
 0x219   :  { %3738 = vmatpush1.bf16.msk.msra.mxu0 %vm4951_vm6, %v3736_v7  ;;  %3786 = vmatpush1.bf16.msk.msra.mxu1 %vm4956_vm5, %v3784_v8 }
 0x21a   :  { %v1144_v17 = vpop.f32.mrb[86].mxu0  ;;  %v1305_v50 = vpop.f32.mrb[86].mxu1 }
 0x21b   :  { %v1145_v63 = vadd.f32 %v1144_v17, %v5069_v47  ;;  %v1306_v1 = vadd.f32 %v1305_v50, %v5069_v47  ;;  %v1146_v2 = vpop.f32.mrb[87].mxu0  ;;  %v1307_v4 = vpop.f32.mrb[87].mxu1 }
 0x21c   :  { %v1147_v10 = vadd.f32 %v1146_v2, %v5069_v47  ;;  %v1308_v13 = vadd.f32 %v1307_v4, %v5069_v47  ;;  %v5109_v17 = vpop.permute.xlu1 %1009 }
 0x21d   :  { %v3742_v23 = vpack.c.bf16 %v1145_v63, %v1139_v51  ;;  %v3790_v24 = vpack.c.bf16 %v1306_v1, %v1300_v58 }
 0x21e   :  { %v3739_v25 = vpack.c.bf16 %v1147_v10, %v1141_v6  ;;  %v3787_v26 = vpack.c.bf16 %v1308_v13, %v1302_v9  ;;  %v1150_v27 = vpop.f32.mrb[88].mxu0  ;;  %v1311_v28 = vpop.f32.mrb[88].mxu1 }
 0x21f   :  { %v1152_v30 = vpop.f32.mrb[89].mxu0  ;;  %v1313_v31 = vpop.f32.mrb[89].mxu1  ;;  %v1151_v40 = vadd.f32 %v1150_v27, %v5087_v32  ;;  %v1312_v41 = vadd.f32 %v1311_v28, %v5087_v32 }
 0x220   :  { %3741 = vmatprep.subr.msk.bf16.mxu0 %vm4995_vm10, %v3739_v25  ;;  %3789 = vmatprep.subr.msk.bf16.mxu1 %vm5005_vm9, %v3787_v26  ;;  %v1153_v49 = vadd.f32 %v1152_v30, %v5087_v32  ;;  %v1314_v52 = vadd.f32 %v1313_v31, %v5087_v32  ;;  %v5136_v31 = vld [vmem:[%s5896_s2 + $0x80] sm:$0xff] }
 0x221   :  { %3744 = vmatpush1.bf16.msk.msra.mxu0 %vm4986_vm13, %v3742_v23  ;;  %3792 = vmatpush1.bf16.msk.msra.mxu1 %vm4991_vm7, %v3790_v24 }
 0x222   :  { %v1156_v34 = vpop.f32.mrb[90].mxu0  ;;  %v1317_v39 = vpop.f32.mrb[90].mxu1 }
 0x223   :  { %v1157_v61 = vadd.f32 %v1156_v34, %v5089_v33  ;;  %v1318_v44 = vadd.f32 %v1317_v39, %v5089_v33  ;;  %v1158_v0 = vpop.f32.mrb[91].mxu0  ;;  %v1319_v18 = vpop.f32.mrb[91].mxu1 }
 0x224   :  { %v1159_v21 = vadd.f32 %v1158_v0, %v5089_v33  ;;  %v1320_v48 = vadd.f32 %v1319_v18, %v5089_v33 }
 0x225   :  { %v3748_v62 = vpack.c.bf16 %v1157_v61, %v1151_v40  ;;  %v3796_v7 = vpack.c.bf16 %v1318_v44, %v1312_v41 }
 0x226   :  { %v3745_v8 = vpack.c.bf16 %v1159_v21, %v1153_v49  ;;  %v3793_v11 = vpack.c.bf16 %v1320_v48, %v1314_v52  ;;  %v1162_v12 = vpop.f32.mrb[92].mxu0  ;;  %v1323_v29 = vpop.f32.mrb[92].mxu1 }
 0x227   :  { %v1164_v36 = vpop.f32.mrb[93].mxu0  ;;  %v1325_v43 = vpop.f32.mrb[93].mxu1  ;;  %v1163_v58 = vadd.f32 %v1162_v12, %v5107_v46  ;;  %v1324_v15 = vadd.f32 %v1323_v29, %v5107_v46 }
 0x228   :  { %3747 = vmatprep.subr.msk.bf16.mxu0 %vm4962_vm11, %v3745_v8  ;;  %3795 = vmatprep.subr.msk.bf16.mxu1 %vm4970_vm12, %v3793_v11  ;;  %v1165_v4 = vadd.f32 %v1164_v36, %v5107_v46  ;;  %v1326_v59 = vadd.f32 %v1325_v43, %v5107_v46  ;;  %v5176_v36 = vld [vmem:[%s5896_s2 + $0x90] sm:$0xff] }
 0x229   :  { %3750 = vmatpush1.bf16.msk.msra.mxu0 %vm4951_vm6, %v3748_v62  ;;  %3798 = vmatpush1.bf16.msk.msra.mxu1 %vm4956_vm5, %v3796_v7 }
 0x22a   :  { %v1168_v50 = vpop.f32.mrb[94].mxu0  ;;  %v1329_v51 = vpop.f32.mrb[94].mxu1 }
 0x22b   :  { %v1169_v63 = vadd.f32 %v1168_v50, %v5109_v17  ;;  %v1330_v20 = vadd.f32 %v1329_v51, %v5109_v17  ;;  %v1170_v1 = vpop.f32.mrb[95].mxu0  ;;  %v1331_v2 = vpop.f32.mrb[95].mxu1 }
 0x22c   :  { %v1171_v6 = vadd.f32 %v1170_v1, %v5109_v17  ;;  %v1332_v5 = vadd.f32 %v1331_v2, %v5109_v17 }
 0x22d   :  { %v3754_v9 = vpack.c.bf16 %v1169_v63, %v1163_v58  ;;  %v3802_v10 = vpack.c.bf16 %v1330_v20, %v1324_v15 }
 0x22e   :  { %v3751_v13 = vpack.c.bf16 %v1171_v6, %v1165_v4  ;;  %v3799_v23 = vpack.c.bf16 %v1332_v5, %v1326_v59 }
 0x22f   :  { %v1400_v24 = vpop.f32.mrb[96].mxu0  ;;  %v1561_v25 = vpop.f32.mrb[96].mxu1 }
 0x230   :  { %v1402_v26 = vpop.f32.mrb[97].mxu0  ;;  %v1563_v27 = vpop.f32.mrb[97].mxu1  ;;  %3753 = vmatprep.subr.msk.bf16.mxu0 %vm4995_vm10, %v3751_v13  ;;  %3801 = vmatprep.subr.msk.bf16.mxu1 %vm5005_vm9, %v3799_v23  ;;  %v1401_v28 = vadd.f32 %v1400_v24, %v4937_v60  ;;  %v1562_v30 = vadd.f32 %v1561_v25, %v4937_v60 }
 0x231   :  { %3756 = vmatpush1.bf16.msk.msra.mxu0 %vm4986_vm13, %v3754_v9  ;;  %3804 = vmatpush1.bf16.msk.msra.mxu1 %vm4991_vm7, %v3802_v10  ;;  %v1403_v53 = vadd.f32 %v1402_v26, %v4937_v60  ;;  %v1564_v39 = vadd.f32 %v1563_v27, %v4937_v60  ;;  %v5151_v60 = vld [vmem:[%s5896_s2 + $0x88] sm:$0xff]  ;;  %v5508_v24 = vpop.permute.xlu1 %1857 }
 0x232   :  { %vm1660_vm6 = vcmp.gt.f32.partialorder %v1401_v28, 0.0  ;;  %vm1662_vm5 = vcmp.gt.f32.partialorder %v1562_v30, 0.0 }
 0x233   :  { %v1406_v34 = vpop.f32.mrb[98].mxu0  ;;  %v1567_v57 = vpop.f32.mrb[98].mxu1  ;;  %vm1661_vm2 = vcmp.gt.f32.partialorder %v1403_v53, 0.0  ;;  %vm1663_vm1 = vcmp.gt.f32.partialorder %v1564_v39, 0.0 }
 0x234   :  { %v1407_v40 = vadd.f32 %v1406_v34, %v4941_v16  ;;  %v1568_v41 = vadd.f32 %v1567_v57, %v4941_v16  ;;  %v1408_v37 = vpop.f32.mrb[99].mxu0  ;;  %v1569_v61 = vpop.f32.mrb[99].mxu1  ;;  %1995 = vmatmul.mubr.f32.vlgmr.msra.gmra.mrb[128].mxu0 %v5136_v31  ;;  %2156 = vmatmul.mubr.f32.vlgmr.msra.gmra.mrb[128].mxu1 %v5136_v31 }
 0x235   :  { %v1409_v42 = vadd.f32 %v1408_v37, %v4941_v16  ;;  %v1570_v44 = vadd.f32 %v1569_v61, %v4941_v16  ;;  %2000 = vmatprep.mubr.f32.mxu0 %v4097_v3  ;;  %2161 = vmatprep.mubr.f32.mxu1 %v4097_v3 }
 0x236   :  { %vm1668_vm11 = vcmp.gt.f32.partialorder %v1407_v40, 0.0  ;;  %v3808_v0 = vpack.c.bf16 %v1407_v40, %v1401_v28  ;;  %vm1670_vm12 = vcmp.gt.f32.partialorder %v1568_v41, 0.0  ;;  %v3856_v18 = vpack.c.bf16 %v1568_v41, %v1562_v30  ;;  %v5225_v28 = vld [vmem:[%s5896_s2 + $0xa0] sm:$0xff] }
 0x237   :  { %vm5153_vm14 = vmpackc.low %vm1668_vm11, %vm1660_vm6  ;;  %vm1669_vm15 = vcmp.gt.f32.partialorder %v1409_v42, 0.0  ;;  %v3805_v52 = vpack.c.bf16 %v1409_v42, %v1403_v53  ;;  %vm1671_vm0 = vcmp.gt.f32.partialorder %v1570_v44, 0.0  ;;  %v3853_v16 = vpack.c.bf16 %v1570_v44, %v1564_v39  ;;  %v1412_v21 = vpop.f32.mrb[100].mxu0  ;;  %v1573_v48 = vpop.f32.mrb[100].mxu1 }
 0x238   :  { %vm5158_vm13 = vmpackc.low %vm1670_vm12, %vm1662_vm5  ;;  %v1414_v7 = vpop.f32.mrb[101].mxu0  ;;  %v1575_v8 = vpop.f32.mrb[101].mxu1  ;;  %2001 = vmatmul.mubr.f32.gmra.mrb[130].mxu0 %v5151_v60  ;;  %2162 = vmatmul.mubr.f32.gmra.mrb[130].mxu1 %v5151_v60  ;;  %v1413_v11 = vadd.f32 %v1412_v21, %v4943_v22  ;;  %v1574_v12 = vadd.f32 %v1573_v48, %v4943_v22 }
 0x239   :  { %vm5167_vm3 = vmpackc.low %vm1669_vm15, %vm1661_vm2  ;;  %2006 = vmatprep.mubr.f32.mxu0 %v4097_v3  ;;  %2167 = vmatprep.mubr.f32.mxu1 %v4097_v3  ;;  %v1415_v50 = vadd.f32 %v1414_v7, %v4943_v22  ;;  %v1576_v15 = vadd.f32 %v1575_v8, %v4943_v22  ;;  %v5203_v22 = vld [vmem:[%s5896_s2 + $0x98] sm:$0xff] }
 0x23a   :  { %3807 = vmatprep.subr.msk.bf16.mxu0 %vm5167_vm3, %v3805_v52  ;;  %vm5181_vm4 = vmpackc.low %vm1671_vm0, %vm1663_vm1  ;;  %vm1676_vm7 = vcmp.gt.f32.partialorder %v1413_v11, 0.0  ;;  %vm1678_vm8 = vcmp.gt.f32.partialorder %v1574_v12, 0.0  ;;  %v5255_v52 = vld [vmem:[%s5896_s2 + $0xa8] sm:$0xff] }
 0x23b   :  { %3855 = vmatprep.subr.msk.bf16.mxu1 %vm5181_vm4, %v3853_v16  ;;  %3810 = vmatpush1.bf16.msk.msra.mxu0 %vm5153_vm14, %v3808_v0  ;;  %v1418_v51 = vpop.f32.mrb[102].mxu0  ;;  %v1579_v58 = vpop.f32.mrb[102].mxu1  ;;  %vm1677_vm12 = vcmp.gt.f32.partialorder %v1415_v50, 0.0  ;;  %vm1679_vm0 = vcmp.gt.f32.partialorder %v1576_v15, 0.0 }
 0x23c   :  { %3858 = vmatpush1.bf16.msk.msra.mxu1 %vm5158_vm13, %v3856_v18  ;;  %v1419_v63 = vadd.f32 %v1418_v51, %v4966_v19  ;;  %v1580_v20 = vadd.f32 %v1579_v58, %v4966_v19  ;;  %v1420_v1 = vpop.f32.mrb[103].mxu0  ;;  %v1581_v2 = vpop.f32.mrb[103].mxu1  ;;  %2007 = vmatmul.mubr.f32.gmra.mrb[132].mxu0 %v5176_v36 }
 0x23d   :  { %v1421_v4 = vadd.f32 %v1420_v1, %v4966_v19  ;;  %v1582_v59 = vadd.f32 %v1581_v2, %v4966_v19  ;;  %2168 = vmatmul.mubr.f32.gmra.mrb[132].mxu1 %v5176_v36  ;;  %2012 = vmatprep.mubr.f32.mxu0 %v4097_v3 }
 0x23e   :  { %vm1684_vm10 = vcmp.gt.f32.partialorder %v1419_v63, 0.0  ;;  %v3814_v6 = vpack.c.bf16 %v1419_v63, %v1413_v11  ;;  %vm1686_vm9 = vcmp.gt.f32.partialorder %v1580_v20, 0.0  ;;  %v3862_v5 = vpack.c.bf16 %v1580_v20, %v1574_v12  ;;  %2173 = vmatprep.mubr.f32.mxu1 %v4097_v3 }
 0x23f   :  { %vm5206_vm6 = vmpackc.low %vm1684_vm10, %vm1676_vm7  ;;  %vm1685_vm5 = vcmp.gt.f32.partialorder %v1421_v4, 0.0  ;;  %v3811_v19 = vpack.c.bf16 %v1421_v4, %v1415_v50  ;;  %vm1687_vm11 = vcmp.gt.f32.partialorder %v1582_v59, 0.0  ;;  %v3859_v10 = vpack.c.bf16 %v1582_v59, %v1576_v15  ;;  %v1424_v13 = vpop.f32.mrb[104].mxu0  ;;  %v1585_v23 = vpop.f32.mrb[104].mxu1 }
 0x240   :  { %vm5211_vm15 = vmpackc.low %vm1686_vm9, %vm1678_vm8  ;;  %v1426_v25 = vpop.f32.mrb[105].mxu0  ;;  %v1587_v26 = vpop.f32.mrb[105].mxu1  ;;  %2013 = vmatmul.mubr.f32.gmra.mrb[134].mxu0 %v5203_v22  ;;  %v1425_v53 = vadd.f32 %v1424_v13, %v4999_v56  ;;  %v1586_v34 = vadd.f32 %v1585_v23, %v4999_v56 }
 0x241   :  { %2174 = vmatmul.mubr.f32.gmra.mrb[134].mxu1 %v5203_v22  ;;  %vm5217_vm2 = vmpackc.low %vm1685_vm5, %vm1677_vm12  ;;  %2018 = vmatprep.mubr.f32.mxu0 %v4097_v3  ;;  %v1427_v40 = vadd.f32 %v1426_v25, %v4999_v56  ;;  %v1588_v44 = vadd.f32 %v1587_v26, %v4999_v56 }
 0x242   :  { %3813 = vmatprep.subr.msk.bf16.mxu0 %vm5217_vm2, %v3811_v19  ;;  %vm5230_vm1 = vmpackc.low %vm1687_vm11, %vm1679_vm0  ;;  %2179 = vmatprep.mubr.f32.mxu1 %v4097_v3  ;;  %v5289_v19 = vld [vmem:[%s5896_s2 + $0xb8] sm:$0xff] }
 0x243   :  { %3861 = vmatprep.subr.msk.bf16.mxu1 %vm5230_vm1, %v3859_v10  ;;  %3816 = vmatpush1.bf16.msk.msra.mxu0 %vm5206_vm6, %v3814_v6  ;;  %v1430_v57 = vpop.f32.mrb[106].mxu0  ;;  %v1591_v39 = vpop.f32.mrb[106].mxu1 }
 0x244   :  { %3864 = vmatpush1.bf16.msk.msra.mxu1 %vm5211_vm15, %v3862_v5  ;;  %v1431_v41 = vadd.f32 %v1430_v57, %v5001_v45  ;;  %v1592_v37 = vadd.f32 %v1591_v39, %v5001_v45  ;;  %v1432_v61 = vpop.f32.mrb[107].mxu0  ;;  %v1593_v42 = vpop.f32.mrb[107].mxu1  ;;  %2019 = vmatmul.mubr.f32.gmra.mrb[136].mxu0 %v5225_v28 }
 0x245   :  { %v1433_v0 = vadd.f32 %v1432_v61, %v5001_v45  ;;  %v1594_v18 = vadd.f32 %v1593_v42, %v5001_v45  ;;  %2180 = vmatmul.mubr.f32.gmra.mrb[136].mxu1 %v5225_v28  ;;  %2024 = vmatprep.mubr.f32.mxu0 %v4097_v3  ;;  %v5265_v45 = vld [vmem:[%s5896_s2 + $0xb0] sm:$0xff] }
 0x246   :  { %v3820_v16 = vpack.c.bf16 %v1431_v41, %v1425_v53  ;;  %v3868_v21 = vpack.c.bf16 %v1592_v37, %v1586_v34  ;;  %2185 = vmatprep.mubr.f32.mxu1 %v4097_v3 }
 0x247   :  { %v3817_v48 = vpack.c.bf16 %v1433_v0, %v1427_v40  ;;  %v3865_v7 = vpack.c.bf16 %v1594_v18, %v1588_v44  ;;  %v1436_v56 = vpop.f32.mrb[108].mxu0  ;;  %v1597_v8 = vpop.f32.mrb[108].mxu1 }
 0x248   :  { %v1438_v11 = vpop.f32.mrb[109].mxu0  ;;  %v1599_v12 = vpop.f32.mrb[109].mxu1  ;;  %2025 = vmatmul.mubr.f32.gmra.mrb[138].mxu0 %v5255_v52  ;;  %v1437_v50 = vadd.f32 %v1436_v56, %v5027_v54  ;;  %v1598_v51 = vadd.f32 %v1597_v8, %v5027_v54 }
 0x249   :  { %2186 = vmatmul.mubr.f32.gmra.mrb[138].mxu1 %v5255_v52  ;;  %3819 = vmatprep.subr.msk.bf16.mxu0 %vm5167_vm3, %v3817_v48  ;;  %v1439_v63 = vadd.f32 %v1438_v11, %v5027_v54  ;;  %v1600_v59 = vadd.f32 %v1599_v12, %v5027_v54  ;;  %v5323_v48 = vld [vmem:[%s5896_s2 + $0xc8] sm:$0xff] }
 0x24a   :  { %3867 = vmatprep.subr.msk.bf16.mxu1 %vm5181_vm4, %v3865_v7  ;;  %3822 = vmatpush1.bf16.msk.msra.mxu0 %vm5153_vm14, %v3820_v16 }
 0x24b   :  { %3870 = vmatpush1.bf16.msk.msra.mxu1 %vm5158_vm13, %v3868_v21  ;;  %v1442_v58 = vpop.f32.mrb[110].mxu0  ;;  %v1603_v15 = vpop.f32.mrb[110].mxu1  ;;  %2030 = vmatprep.mubr.f32.mxu0 %v4097_v3 }
 0x24c   :  { %v1443_v20 = vadd.f32 %v1442_v58, %v5029_v55  ;;  %v1604_v1 = vadd.f32 %v1603_v15, %v5029_v55  ;;  %v1444_v2 = vpop.f32.mrb[111].mxu0  ;;  %v1605_v4 = vpop.f32.mrb[111].mxu1  ;;  %2191 = vmatprep.mubr.f32.mxu1 %v4097_v3  ;;  %2031 = vmatmul.mubr.f32.gmra.mrb[140].mxu0 %v5265_v45 }
 0x24d   :  { %v1445_v6 = vadd.f32 %v1444_v2, %v5029_v55  ;;  %v1606_v5 = vadd.f32 %v1605_v4, %v5029_v55  ;;  %2192 = vmatmul.mubr.f32.gmra.mrb[140].mxu1 %v5265_v45  ;;  %2036 = vmatprep.mubr.f32.mxu0 %v4097_v3  ;;  %v5299_v55 = vld [vmem:[%s5896_s2 + $0xc0] sm:$0xff] }
 0x24e   :  { %v3826_v10 = vpack.c.bf16 %v1443_v20, %v1437_v50  ;;  %v3874_v13 = vpack.c.bf16 %v1604_v1, %v1598_v51  ;;  %2197 = vmatprep.mubr.f32.mxu1 %v4097_v3 }
 0x24f   :  { %v3823_v23 = vpack.c.bf16 %v1445_v6, %v1439_v63  ;;  %v3871_v25 = vpack.c.bf16 %v1606_v5, %v1600_v59  ;;  %v1448_v54 = vpop.f32.mrb[112].mxu0  ;;  %v1609_v26 = vpop.f32.mrb[112].mxu1 }
 0x250   :  { %v1450_v53 = vpop.f32.mrb[113].mxu0  ;;  %v1611_v34 = vpop.f32.mrb[113].mxu1  ;;  %2037 = vmatmul.mubr.f32.gmra.mrb[142].mxu0 %v5289_v19  ;;  %v1449_v57 = vadd.f32 %v1448_v54, %v5047_v35  ;;  %v1610_v39 = vadd.f32 %v1609_v26, %v5047_v35 }
 0x251   :  { %2198 = vmatmul.mubr.f32.gmra.mrb[142].mxu1 %v5289_v19  ;;  %3825 = vmatprep.subr.msk.bf16.mxu0 %vm5217_vm2, %v3823_v23  ;;  %v1451_v37 = vadd.f32 %v1450_v53, %v5047_v35  ;;  %v1612_v18 = vadd.f32 %v1611_v34, %v5047_v35  ;;  %v5357_v23 = vld [vmem:[%s5896_s2 + $0xd8] sm:$0xff] }
 0x252   :  { %3873 = vmatprep.subr.msk.bf16.mxu1 %vm5230_vm1, %v3871_v25  ;;  %3828 = vmatpush1.bf16.msk.msra.mxu0 %vm5206_vm6, %v3826_v10 }
 0x253   :  { %3876 = vmatpush1.bf16.msk.msra.mxu1 %vm5211_vm15, %v3874_v13  ;;  %v1454_v40 = vpop.f32.mrb[114].mxu0  ;;  %v1615_v41 = vpop.f32.mrb[114].mxu1  ;;  %2042 = vmatprep.mubr.f32.mxu0 %v4097_v3 }
 0x254   :  { %v1455_v61 = vadd.f32 %v1454_v40, %v5049_v38  ;;  %v1616_v42 = vadd.f32 %v1615_v41, %v5049_v38  ;;  %v1456_v44 = vpop.f32.mrb[115].mxu0  ;;  %v1617_v0 = vpop.f32.mrb[115].mxu1  ;;  %2203 = vmatprep.mubr.f32.mxu1 %v4097_v3  ;;  %2043 = vmatmul.mubr.f32.gmra.mrb[144].mxu0 %v5299_v55 }
 0x255   :  { %v1457_v16 = vadd.f32 %v1456_v44, %v5049_v38  ;;  %v1618_v21 = vadd.f32 %v1617_v0, %v5049_v38  ;;  %2204 = vmatmul.mubr.f32.gmra.mrb[144].mxu1 %v5299_v55  ;;  %2048 = vmatprep.mubr.f32.mxu0 %v4097_v3  ;;  %v5333_v38 = vld [vmem:[%s5896_s2 + $0xd0] sm:$0xff] }
 0x256   :  { %v3832_v7 = vpack.c.bf16 %v1455_v61, %v1449_v57  ;;  %v3880_v56 = vpack.c.bf16 %v1616_v42, %v1610_v39  ;;  %2209 = vmatprep.mubr.f32.mxu1 %v4097_v3 }
 0x257   :  { %v3829_v8 = vpack.c.bf16 %v1457_v16, %v1451_v37  ;;  %v3877_v11 = vpack.c.bf16 %v1618_v21, %v1612_v18  ;;  %v1460_v35 = vpop.f32.mrb[116].mxu0  ;;  %v1621_v12 = vpop.f32.mrb[116].mxu1 }
 0x258   :  { %v1462_v50 = vpop.f32.mrb[117].mxu0  ;;  %v1623_v51 = vpop.f32.mrb[117].mxu1  ;;  %2049 = vmatmul.mubr.f32.gmra.mrb[146].mxu0 %v5323_v48  ;;  %v1461_v58 = vadd.f32 %v1460_v35, %v5067_v14  ;;  %v1622_v15 = vadd.f32 %v1621_v12, %v5067_v14 }
 0x259   :  { %2210 = vmatmul.mubr.f32.gmra.mrb[146].mxu1 %v5323_v48  ;;  %3831 = vmatprep.subr.msk.bf16.mxu0 %vm5167_vm3, %v3829_v8  ;;  %v1463_v1 = vadd.f32 %v1462_v50, %v5067_v14  ;;  %v1624_v5 = vadd.f32 %v1623_v51, %v5067_v14  ;;  %v5391_v8 = vld [vmem:[%s5896_s2 + $0xe8] sm:$0xff] }
 0x25a   :  { %3879 = vmatprep.subr.msk.bf16.mxu1 %vm5181_vm4, %v3877_v11  ;;  %3834 = vmatpush1.bf16.msk.msra.mxu0 %vm5153_vm14, %v3832_v7 }
 0x25b   :  { %3882 = vmatpush1.bf16.msk.msra.mxu1 %vm5158_vm13, %v3880_v56  ;;  %v1466_v63 = vpop.f32.mrb[118].mxu0  ;;  %v1627_v20 = vpop.f32.mrb[118].mxu1  ;;  %2054 = vmatprep.mubr.f32.mxu0 %v4097_v3 }
 0x25c   :  { %v1467_v2 = vadd.f32 %v1466_v63, %v5069_v47  ;;  %v1628_v4 = vadd.f32 %v1627_v20, %v5069_v47  ;;  %v1468_v59 = vpop.f32.mrb[119].mxu0  ;;  %v1629_v6 = vpop.f32.mrb[119].mxu1  ;;  %2215 = vmatprep.mubr.f32.mxu1 %v4097_v3  ;;  %2055 = vmatmul.mubr.f32.gmra.mrb[148].mxu0 %v5333_v38 }
 0x25d   :  { %v1469_v10 = vadd.f32 %v1468_v59, %v5069_v47  ;;  %v1630_v13 = vadd.f32 %v1629_v6, %v5069_v47  ;;  %2216 = vmatmul.mubr.f32.gmra.mrb[148].mxu1 %v5333_v38  ;;  %2060 = vmatprep.mubr.f32.mxu0 %v4097_v3  ;;  %v5367_v47 = vld [vmem:[%s5896_s2 + $0xe0] sm:$0xff] }
 0x25e   :  { %v3838_v25 = vpack.c.bf16 %v1467_v2, %v1461_v58  ;;  %v3886_v54 = vpack.c.bf16 %v1628_v4, %v1622_v15  ;;  %2221 = vmatprep.mubr.f32.mxu1 %v4097_v3 }
 0x25f   :  { %v3835_v26 = vpack.c.bf16 %v1469_v10, %v1463_v1  ;;  %v3883_v53 = vpack.c.bf16 %v1630_v13, %v1624_v5  ;;  %v1472_v14 = vpop.f32.mrb[120].mxu0  ;;  %v1633_v34 = vpop.f32.mrb[120].mxu1  ;;  %v5425_v10 = vld [vmem:[%s5896_s2 + $0xf8] sm:$0xff] }
 0x260   :  { %v1474_v57 = vpop.f32.mrb[121].mxu0  ;;  %v1635_v39 = vpop.f32.mrb[121].mxu1  ;;  %2061 = vmatmul.mubr.f32.gmra.mrb[150].mxu0 %v5357_v23  ;;  %v1473_v40 = vadd.f32 %v1472_v14, %v5087_v32  ;;  %v1634_v41 = vadd.f32 %v1633_v34, %v5087_v32 }
 0x261   :  { %2222 = vmatmul.mubr.f32.gmra.mrb[150].mxu1 %v5357_v23  ;;  %3837 = vmatprep.subr.msk.bf16.mxu0 %vm5217_vm2, %v3835_v26  ;;  %v1475_v42 = vadd.f32 %v1474_v57, %v5087_v32  ;;  %v1636_v21 = vadd.f32 %v1635_v39, %v5087_v32 }
 0x262   :  { %3885 = vmatprep.subr.msk.bf16.mxu1 %vm5230_vm1, %v3883_v53  ;;  %3840 = vmatpush1.bf16.msk.msra.mxu0 %vm5206_vm6, %v3838_v25 }
 0x263   :  { %3888 = vmatpush1.bf16.msk.msra.mxu1 %vm5211_vm15, %v3886_v54  ;;  %v1478_v37 = vpop.f32.mrb[122].mxu0  ;;  %v1639_v61 = vpop.f32.mrb[122].mxu1  ;;  %2066 = vmatprep.mubr.f32.mxu0 %v4097_v3 }
 0x264   :  { %v1479_v44 = vadd.f32 %v1478_v37, %v5089_v33  ;;  %v1640_v0 = vadd.f32 %v1639_v61, %v5089_v33  ;;  %v1480_v18 = vpop.f32.mrb[123].mxu0  ;;  %v1641_v16 = vpop.f32.mrb[123].mxu1  ;;  %2227 = vmatprep.mubr.f32.mxu1 %v4097_v3  ;;  %2067 = vmatmul.mubr.f32.gmra.mrb[152].mxu0 %v5367_v47 }
 0x265   :  { %v1481_v7 = vadd.f32 %v1480_v18, %v5089_v33  ;;  %v1642_v56 = vadd.f32 %v1641_v16, %v5089_v33  ;;  %2228 = vmatmul.mubr.f32.gmra.mrb[152].mxu1 %v5367_v47  ;;  %2072 = vmatprep.mubr.f32.mxu0 %v4097_v3  ;;  %v5401_v33 = vld [vmem:[%s5896_s2 + $0xf0] sm:$0xff] }
 0x266   :  { %v3844_v11 = vpack.c.bf16 %v1479_v44, %v1473_v40  ;;  %v3892_v35 = vpack.c.bf16 %v1640_v0, %v1634_v41  ;;  %2233 = vmatprep.mubr.f32.mxu1 %v4097_v3 }
 0x267   :  { %v3841_v12 = vpack.c.bf16 %v1481_v7, %v1475_v42  ;;  %v3889_v50 = vpack.c.bf16 %v1642_v56, %v1636_v21  ;;  %v1484_v32 = vpop.f32.mrb[124].mxu0  ;;  %v1645_v51 = vpop.f32.mrb[124].mxu1 }
 0x268   :  { %v1486_v58 = vpop.f32.mrb[125].mxu0  ;;  %v1647_v15 = vpop.f32.mrb[125].mxu1  ;;  %2073 = vmatmul.mubr.f32.gmra.mrb[154].mxu0 %v5391_v8  ;;  %v1485_v63 = vadd.f32 %v1484_v32, %v5107_v46  ;;  %v1646_v20 = vadd.f32 %v1645_v51, %v5107_v46 }
 0x269   :  { %2234 = vmatmul.mubr.f32.gmra.mrb[154].mxu1 %v5391_v8  ;;  %3843 = vmatprep.subr.msk.bf16.mxu0 %vm5167_vm3, %v3841_v12  ;;  %v1487_v2 = vadd.f32 %v1486_v58, %v5107_v46  ;;  %v1648_v6 = vadd.f32 %v1647_v15, %v5107_v46  ;;  %v5504_v46 = vpop.permute.xlu0 %1852  ;;  %v5539_v21 = vpop.permute.xlu1 %1867 }
 0x26a   :  { %3891 = vmatprep.subr.msk.bf16.mxu1 %vm5181_vm4, %v3889_v50  ;;  %3846 = vmatpush1.bf16.msk.msra.mxu0 %vm5153_vm14, %v3844_v11 }
 0x26b   :  { %3894 = vmatpush1.bf16.msk.msra.mxu1 %vm5158_vm13, %v3892_v35  ;;  %v1490_v29 = vpop.f32.mrb[126].mxu0  ;;  %v1651_v1 = vpop.f32.mrb[126].mxu1  ;;  %2078 = vmatprep.mubr.f32.mxu0 %v4097_v3 }
 0x26c   :  { %v1491_v4 = vadd.f32 %v1490_v29, %v5109_v17  ;;  %v1652_v43 = vadd.f32 %v1651_v1, %v5109_v17  ;;  %v1492_v59 = vpop.f32.mrb[127].mxu0  ;;  %v1653_v49 = vpop.f32.mrb[127].mxu1  ;;  %2239 = vmatprep.mubr.f32.mxu1 %v4097_v3  ;;  %2079 = vmatmul.mubr.f32.gmra.mrb[156].mxu0 %v5401_v33 }
 0x26d   :  { %v1493_v62 = vadd.f32 %v1492_v59, %v5109_v17  ;;  %v1654_v5 = vadd.f32 %v1653_v49, %v5109_v17  ;;  %2240 = vmatmul.mubr.f32.gmra.mrb[156].mxu1 %v5401_v33  ;;  %2084 = vmatprep.mubr.f32.mxu0 %v4097_v3  ;;  %v5516_v34 = vpop.permute.xlu0 %1862 }
 0x26e   :  { %v3850_v13 = vpack.c.bf16 %v1491_v4, %v1485_v63  ;;  %v3898_v25 = vpack.c.bf16 %v1652_v43, %v1646_v20  ;;  %2245 = vmatprep.mubr.f32.mxu1 %v4097_v3 }
 0x26f   :  { %v3847_v54 = vpack.c.bf16 %v1493_v62, %v1487_v2  ;;  %v3895_v26 = vpack.c.bf16 %v1654_v5, %v1648_v6  ;;  %v5573_v5 = vpop.permute.xlu1 %1877 }
 0x270   :  { %2085 = vmatmul.mubr.f32.gmra.mrb[158].mxu0 %v5425_v10 }
 0x271   :  { %2246 = vmatmul.mubr.f32.gmra.mrb[158].mxu1 %v5425_v10  ;;  %3849 = vmatprep.subr.msk.bf16.mxu0 %vm5217_vm2, %v3847_v54  ;;  %v5565_v6 = vpop.permute.xlu0 %1872 }
 0x272   :  { %3897 = vmatprep.subr.msk.bf16.mxu1 %vm5230_vm1, %v3895_v26  ;;  %3852 = vmatpush1.bf16.msk.msra.mxu0 %vm5206_vm6, %v3850_v13 }
 0x273   :  { %3900 = vmatpush1.bf16.msk.msra.mxu1 %vm5211_vm15, %v3898_v25  ;;  %2316 = vmatprep.mubr.f32.mxu0 %v4097_v3 }
 0x274   :  { %2477 = vmatprep.mubr.f32.mxu1 %v4097_v3 }
 0x275   :  { %2317 = vmatmul.mubr.f32.vlgmr.msra.gmra.mrb[160].mxu0 %v5136_v31 }
 0x276   :  { %2478 = vmatmul.mubr.f32.vlgmr.msra.gmra.mrb[160].mxu1 %v5136_v31  ;;  %2322 = vmatprep.mubr.f32.mxu0 %v4097_v3 }
 0x277   :  { %2483 = vmatprep.mubr.f32.mxu1 %v4097_v3 }
 0x279   :  { %2323 = vmatmul.mubr.f32.gmra.mrb[162].mxu0 %v5151_v60 }
 0x27a   :  { %2484 = vmatmul.mubr.f32.gmra.mrb[162].mxu1 %v5151_v60  ;;  %2328 = vmatprep.mubr.f32.mxu0 %v4097_v3 }
 0x27b   :  { %2489 = vmatprep.mubr.f32.mxu1 %v4097_v3 }
 0x27d   :  { %2329 = vmatmul.mubr.f32.gmra.mrb[164].mxu0 %v5176_v36 }
 0x27e   :  { %2490 = vmatmul.mubr.f32.gmra.mrb[164].mxu1 %v5176_v36  ;;  %2334 = vmatprep.mubr.f32.mxu0 %v4097_v3 }
 0x27f   :  { %2495 = vmatprep.mubr.f32.mxu1 %v4097_v3 }
 0x281   :  { %2335 = vmatmul.mubr.f32.gmra.mrb[166].mxu0 %v5203_v22 }
 0x282   :  { %2496 = vmatmul.mubr.f32.gmra.mrb[166].mxu1 %v5203_v22  ;;  %2340 = vmatprep.mubr.f32.mxu0 %v4097_v3 }
 0x283   :  { %2501 = vmatprep.mubr.f32.mxu1 %v4097_v3 }
 0x285   :  { %2341 = vmatmul.mubr.f32.gmra.mrb[168].mxu0 %v5225_v28 }
 0x286   :  { %2502 = vmatmul.mubr.f32.gmra.mrb[168].mxu1 %v5225_v28  ;;  %2346 = vmatprep.mubr.f32.mxu0 %v4097_v3 }
 0x287   :  { %2507 = vmatprep.mubr.f32.mxu1 %v4097_v3 }
 0x289   :  { %2347 = vmatmul.mubr.f32.gmra.mrb[170].mxu0 %v5255_v52 }
 0x28a   :  { %2508 = vmatmul.mubr.f32.gmra.mrb[170].mxu1 %v5255_v52  ;;  %2352 = vmatprep.mubr.f32.mxu0 %v4097_v3 }
 0x28b   :  { %2513 = vmatprep.mubr.f32.mxu1 %v4097_v3 }
 0x28d   :  { %2353 = vmatmul.mubr.f32.gmra.mrb[172].mxu0 %v5265_v45 }
 0x28e   :  { %2514 = vmatmul.mubr.f32.gmra.mrb[172].mxu1 %v5265_v45  ;;  %2358 = vmatprep.mubr.f32.mxu0 %v4097_v3 }
 0x28f   :  { %2519 = vmatprep.mubr.f32.mxu1 %v4097_v3 }
 0x291   :  { %2359 = vmatmul.mubr.f32.gmra.mrb[174].mxu0 %v5289_v19 }
 0x292   :  { %2520 = vmatmul.mubr.f32.gmra.mrb[174].mxu1 %v5289_v19  ;;  %2364 = vmatprep.mubr.f32.mxu0 %v4097_v3 }
 0x293   :  { %2525 = vmatprep.mubr.f32.mxu1 %v4097_v3 }
 0x295   :  { %2365 = vmatmul.mubr.f32.gmra.mrb[176].mxu0 %v5299_v55 }
 0x296   :  { %2526 = vmatmul.mubr.f32.gmra.mrb[176].mxu1 %v5299_v55  ;;  %2370 = vmatprep.mubr.f32.mxu0 %v4097_v3 }
 0x297   :  { %2531 = vmatprep.mubr.f32.mxu1 %v4097_v3 }
 0x299   :  { %2371 = vmatmul.mubr.f32.gmra.mrb[178].mxu0 %v5323_v48 }
 0x29a   :  { %2532 = vmatmul.mubr.f32.gmra.mrb[178].mxu1 %v5323_v48  ;;  %2376 = vmatprep.mubr.f32.mxu0 %v4097_v3 }
 0x29b   :  { %2537 = vmatprep.mubr.f32.mxu1 %v4097_v3 }
 0x29d   :  { %2377 = vmatmul.mubr.f32.gmra.mrb[180].mxu0 %v5333_v38 }
 0x29e   :  { %2538 = vmatmul.mubr.f32.gmra.mrb[180].mxu1 %v5333_v38  ;;  %2382 = vmatprep.mubr.f32.mxu0 %v4097_v3 }
 0x29f   :  { %2543 = vmatprep.mubr.f32.mxu1 %v4097_v3 }
 0x2a1   :  { %2383 = vmatmul.mubr.f32.gmra.mrb[182].mxu0 %v5357_v23 }
 0x2a2   :  { %2544 = vmatmul.mubr.f32.gmra.mrb[182].mxu1 %v5357_v23  ;;  %2388 = vmatprep.mubr.f32.mxu0 %v4097_v3 }
 0x2a3   :  { %2549 = vmatprep.mubr.f32.mxu1 %v4097_v3 }
 0x2a5   :  { %2389 = vmatmul.mubr.f32.gmra.mrb[184].mxu0 %v5367_v47 }
 0x2a6   :  { %2550 = vmatmul.mubr.f32.gmra.mrb[184].mxu1 %v5367_v47  ;;  %2394 = vmatprep.mubr.f32.mxu0 %v4097_v3 }
 0x2a7   :  { %2555 = vmatprep.mubr.f32.mxu1 %v4097_v3 }
 0x2a9   :  { %2395 = vmatmul.mubr.f32.gmra.mrb[186].mxu0 %v5391_v8 }
 0x2aa   :  { %2556 = vmatmul.mubr.f32.gmra.mrb[186].mxu1 %v5391_v8  ;;  %2400 = vmatprep.mubr.f32.mxu0 %v4097_v3 }
 0x2ab   :  { %2561 = vmatprep.mubr.f32.mxu1 %v4097_v3 }
 0x2ad   :  { %2401 = vmatmul.mubr.f32.gmra.mrb[188].mxu0 %v5401_v33 }
 0x2ae   :  { %2562 = vmatmul.mubr.f32.gmra.mrb[188].mxu1 %v5401_v33  ;;  %2406 = vmatprep.mubr.f32.mxu0 %v4097_v3 }
 0x2af   :  { %2567 = vmatprep.mubr.f32.mxu1 %v4097_v3 }
 0x2b1   :  { %2407 = vmatmul.mubr.f32.gmra.mrb[190].mxu0 %v5425_v10 }
 0x2b2   :  { %2568 = vmatmul.mubr.f32.gmra.mrb[190].mxu1 %v5425_v10  ;;  %2805 = vmatprep.mubr.f32.mxu0 %v4097_v3 }
 0x2b3   :  { %2876 = vmatprep.mubr.f32.mxu1 %v4097_v3 }
 0x307   :  { %v1996_v17 = vpop.f32.mrb[128].mxu0  ;;  %v2157_v31 = vpop.f32.mrb[128].mxu1 }
 0x308   :  { %v1998_v60 = vpop.f32.mrb[129].mxu0  ;;  %v2159_v36 = vpop.f32.mrb[129].mxu1  ;;  %v1997_v22 = vadd.f32 %v1996_v17, %v5504_v46  ;;  %v2158_v9 = vadd.f32 %v2157_v31, %v5504_v46 }
 0x309   :  { %v1999_v30 = vadd.f32 %v1998_v60, %v5504_v46  ;;  %v2160_v52 = vadd.f32 %v2159_v36, %v5504_v46 }
 0x30a   :  { %vm2574_vm14 = vcmp.gt.f32.partialorder %v1997_v22, 0.0  ;;  %vm2576_vm13 = vcmp.gt.f32.partialorder %v2158_v9, 0.0 }
 0x30b   :  { %v2002_v27 = vpop.f32.mrb[130].mxu0  ;;  %v2163_v28 = vpop.f32.mrb[130].mxu1  ;;  %vm2575_vm9 = vcmp.gt.f32.partialorder %v1999_v30, 0.0  ;;  %vm2577_vm5 = vcmp.gt.f32.partialorder %v2160_v52, 0.0 }
 0x30c   :  { %v2003_v45 = vadd.f32 %v2002_v27, %v5508_v24  ;;  %v2164_v19 = vadd.f32 %v2163_v28, %v5508_v24  ;;  %v2004_v55 = vpop.f32.mrb[131].mxu0  ;;  %v2165_v48 = vpop.f32.mrb[131].mxu1 }
 0x30d   :  { %v2005_v38 = vadd.f32 %v2004_v55, %v5508_v24  ;;  %v2166_v23 = vadd.f32 %v2165_v48, %v5508_v24 }
 0x30e   :  { %vm2582_vm3 = vcmp.gt.f32.partialorder %v2003_v45, 0.0  ;;  %v3904_v53 = vpack.c.bf16 %v2003_v45, %v1997_v22  ;;  %vm2584_vm4 = vcmp.gt.f32.partialorder %v2164_v19, 0.0  ;;  %v3952_v14 = vpack.c.bf16 %v2164_v19, %v2158_v9 }
 0x30f   :  { %vm5518_vm7 = vmpackc.low %vm2582_vm3, %vm2574_vm14  ;;  %vm2583_vm8 = vcmp.gt.f32.partialorder %v2005_v38, 0.0  ;;  %v3901_v39 = vpack.c.bf16 %v2005_v38, %v1999_v30  ;;  %vm2585_vm10 = vcmp.gt.f32.partialorder %v2166_v23, 0.0  ;;  %v3949_v47 = vpack.c.bf16 %v2166_v23, %v2160_v52  ;;  %v2008_v40 = vpop.f32.mrb[132].mxu0  ;;  %v5591_v23 = vpop.permute.xlu0 %1882 }
 0x310   :  { %vm5523_vm6 = vmpackc.low %vm2584_vm4, %vm2576_vm13  ;;  %v2169_v37 = vpop.f32.mrb[132].mxu1  ;;  %v2010_v61 = vpop.f32.mrb[133].mxu0  ;;  %v2009_v42 = vadd.f32 %v2008_v40, %v5516_v34 }
 0x311   :  { %v2171_v44 = vpop.f32.mrb[133].mxu1  ;;  %vm5528_vm11 = vmpackc.low %vm2583_vm8, %vm2575_vm9  ;;  %v2170_v18 = vadd.f32 %v2169_v37, %v5516_v34  ;;  %v2011_v56 = vadd.f32 %v2010_v61, %v5516_v34 }
 0x312   :  { %3903 = vmatprep.subr.msk.bf16.mxu0 %vm5528_vm11, %v3901_v39  ;;  %vm5535_vm12 = vmpackc.low %vm2585_vm10, %vm2577_vm5  ;;  %vm2590_vm15 = vcmp.gt.f32.partialorder %v2009_v42, 0.0  ;;  %v2172_v12 = vadd.f32 %v2171_v44, %v5516_v34 }
 0x313   :  { %3951 = vmatprep.subr.msk.bf16.mxu1 %vm5535_vm12, %v3949_v47  ;;  %3906 = vmatpush1.bf16.msk.msra.mxu0 %vm5518_vm7, %v3904_v53  ;;  %v2014_v7 = vpop.f32.mrb[134].mxu0  ;;  %vm2592_vm0 = vcmp.gt.f32.partialorder %v2170_v18, 0.0  ;;  %vm2591_vm3 = vcmp.gt.f32.partialorder %v2011_v56, 0.0  ;;  %v5597_v53 = vpop.permute.xlu1 %1887 }
 0x314   :  { %3954 = vmatpush1.bf16.msk.msra.mxu1 %vm5523_vm6, %v3952_v14  ;;  %v2015_v8 = vadd.f32 %v2014_v7, %v5539_v21  ;;  %v2175_v11 = vpop.f32.mrb[134].mxu1  ;;  %v2016_v35 = vpop.f32.mrb[135].mxu0  ;;  %vm2593_vm10 = vcmp.gt.f32.partialorder %v2172_v12, 0.0 }
 0x315   :  { %v2176_v50 = vadd.f32 %v2175_v11, %v5539_v21  ;;  %v2017_v32 = vadd.f32 %v2016_v35, %v5539_v21  ;;  %v2177_v51 = vpop.f32.mrb[135].mxu1 }
 0x316   :  { %vm2598_vm2 = vcmp.gt.f32.partialorder %v2015_v8, 0.0  ;;  %v3910_v58 = vpack.c.bf16 %v2015_v8, %v2009_v42  ;;  %v2178_v15 = vadd.f32 %v2177_v51, %v5539_v21 }
 0x317   :  { %vm5553_vm1 = vmpackc.low %vm2598_vm2, %vm2590_vm15  ;;  %vm2600_vm14 = vcmp.gt.f32.partialorder %v2176_v50, 0.0  ;;  %v3958_v63 = vpack.c.bf16 %v2176_v50, %v2170_v18  ;;  %vm2599_vm13 = vcmp.gt.f32.partialorder %v2017_v32, 0.0  ;;  %v3907_v20 = vpack.c.bf16 %v2017_v32, %v2011_v56  ;;  %v2020_v29 = vpop.f32.mrb[136].mxu0 }
 0x318   :  { %vm5557_vm4 = vmpackc.low %vm2600_vm14, %vm2592_vm0  ;;  %vm2601_vm8 = vcmp.gt.f32.partialorder %v2178_v15, 0.0  ;;  %v3955_v2 = vpack.c.bf16 %v2178_v15, %v2172_v12  ;;  %v2181_v4 = vpop.f32.mrb[136].mxu1  ;;  %v2022_v43 = vpop.f32.mrb[137].mxu0  ;;  %v2021_v13 = vadd.f32 %v2020_v29, %v5565_v6 }
 0x319   :  { %v2183_v59 = vpop.f32.mrb[137].mxu1  ;;  %vm5561_vm9 = vmpackc.low %vm2599_vm13, %vm2591_vm3  ;;  %v2182_v17 = vadd.f32 %v2181_v4, %v5565_v6  ;;  %v2023_v31 = vadd.f32 %v2022_v43, %v5565_v6 }
 0x31a   :  { %3909 = vmatprep.subr.msk.bf16.mxu0 %vm5561_vm9, %v3907_v20  ;;  %vm5569_vm5 = vmpackc.low %vm2601_vm8, %vm2593_vm10  ;;  %v2184_v9 = vadd.f32 %v2183_v59, %v5565_v6  ;;  %v5617_v20 = vpop.permute.xlu1 %1897 }
 0x31b   :  { %3957 = vmatprep.subr.msk.bf16.mxu1 %vm5569_vm5, %v3955_v2  ;;  %3912 = vmatpush1.bf16.msk.msra.mxu0 %vm5553_vm1, %v3910_v58  ;;  %v2026_v10 = vpop.f32.mrb[138].mxu0 }
 0x31c   :  { %3960 = vmatpush1.bf16.msk.msra.mxu1 %vm5557_vm4, %v3958_v63  ;;  %v2027_v25 = vadd.f32 %v2026_v10, %v5573_v5  ;;  %v2187_v54 = vpop.f32.mrb[138].mxu1  ;;  %v2028_v26 = vpop.f32.mrb[139].mxu0 }
 0x31d   :  { %v2188_v60 = vadd.f32 %v2187_v54, %v5573_v5  ;;  %v2029_v36 = vadd.f32 %v2028_v26, %v5573_v5  ;;  %v2189_v22 = vpop.f32.mrb[139].mxu1  ;;  %v5611_v63 = vpop.permute.xlu0 %1892 }
 0x31e   :  { %v3916_v27 = vpack.c.bf16 %v2027_v25, %v2021_v13  ;;  %v2190_v28 = vadd.f32 %v2189_v22, %v5573_v5 }
 0x31f   :  { %v3964_v30 = vpack.c.bf16 %v2188_v60, %v2182_v17  ;;  %v3913_v52 = vpack.c.bf16 %v2029_v36, %v2023_v31  ;;  %v2032_v45 = vpop.f32.mrb[140].mxu0 }
 0x320   :  { %v3961_v19 = vpack.c.bf16 %v2190_v28, %v2184_v9  ;;  %v2193_v55 = vpop.f32.mrb[140].mxu1  ;;  %v2034_v48 = vpop.f32.mrb[141].mxu0  ;;  %v2033_v39 = vadd.f32 %v2032_v45, %v5591_v23 }
 0x321   :  { %v2195_v38 = vpop.f32.mrb[141].mxu1  ;;  %3915 = vmatprep.subr.msk.bf16.mxu0 %vm5528_vm11, %v3913_v52  ;;  %v2194_v61 = vadd.f32 %v2193_v55, %v5591_v23  ;;  %v2035_v42 = vadd.f32 %v2034_v48, %v5591_v23  ;;  %v5631_v45 = vpop.permute.xlu0 %1902 }
 0x322   :  { %3963 = vmatprep.subr.msk.bf16.mxu1 %vm5535_vm12, %v3961_v19  ;;  %3918 = vmatpush1.bf16.msk.msra.mxu0 %vm5518_vm7, %v3916_v27  ;;  %v2196_v56 = vadd.f32 %v2195_v38, %v5591_v23  ;;  %v5637_v19 = vpop.permute.xlu1 %1907 }
 0x323   :  { %3966 = vmatpush1.bf16.msk.msra.mxu1 %vm5523_vm6, %v3964_v30  ;;  %v2038_v14 = vpop.f32.mrb[142].mxu0 }
 0x324   :  { %v2039_v47 = vadd.f32 %v2038_v14, %v5597_v53  ;;  %v2199_v40 = vpop.f32.mrb[142].mxu1  ;;  %v2040_v37 = vpop.f32.mrb[143].mxu0 }
 0x325   :  { %v2200_v44 = vadd.f32 %v2199_v40, %v5597_v53  ;;  %v2041_v18 = vadd.f32 %v2040_v37, %v5597_v53  ;;  %v2201_v7 = vpop.f32.mrb[143].mxu1 }
 0x326   :  { %v3922_v8 = vpack.c.bf16 %v2039_v47, %v2033_v39  ;;  %v2202_v11 = vadd.f32 %v2201_v7, %v5597_v53 }
 0x327   :  { %v3970_v35 = vpack.c.bf16 %v2200_v44, %v2194_v61  ;;  %v3919_v12 = vpack.c.bf16 %v2041_v18, %v2035_v42  ;;  %v2044_v50 = vpop.f32.mrb[144].mxu0 }
 0x328   :  { %v3967_v32 = vpack.c.bf16 %v2202_v11, %v2196_v56  ;;  %v2205_v51 = vpop.f32.mrb[144].mxu1  ;;  %v2046_v58 = vpop.f32.mrb[145].mxu0  ;;  %v2045_v2 = vadd.f32 %v2044_v50, %v5611_v63 }
 0x329   :  { %v2207_v15 = vpop.f32.mrb[145].mxu1  ;;  %3921 = vmatprep.subr.msk.bf16.mxu0 %vm5561_vm9, %v3919_v12  ;;  %v2206_v10 = vadd.f32 %v2205_v51, %v5611_v63  ;;  %v2047_v13 = vadd.f32 %v2046_v58, %v5611_v63  ;;  %v5651_v51 = vpop.permute.xlu0 %1912 }
 0x32a   :  { %3969 = vmatprep.subr.msk.bf16.mxu1 %vm5569_vm5, %v3967_v32  ;;  %3924 = vmatpush1.bf16.msk.msra.mxu0 %vm5553_vm1, %v3922_v8  ;;  %v2208_v17 = vadd.f32 %v2207_v15, %v5611_v63  ;;  %v5657_v58 = vpop.permute.xlu1 %1917 }
 0x32b   :  { %3972 = vmatpush1.bf16.msk.msra.mxu1 %vm5557_vm4, %v3970_v35  ;;  %v2050_v29 = vpop.f32.mrb[146].mxu0 }
 0x32c   :  { %v2051_v4 = vadd.f32 %v2050_v29, %v5617_v20  ;;  %v2211_v43 = vpop.f32.mrb[146].mxu1  ;;  %v2052_v59 = vpop.f32.mrb[147].mxu0 }
 0x32d   :  { %v2212_v25 = vadd.f32 %v2211_v43, %v5617_v20  ;;  %v2053_v54 = vadd.f32 %v2052_v59, %v5617_v20  ;;  %v2213_v26 = vpop.f32.mrb[147].mxu1 }
 0x32e   :  { %v3928_v31 = vpack.c.bf16 %v2051_v4, %v2045_v2  ;;  %v2214_v60 = vadd.f32 %v2213_v26, %v5617_v20 }
 0x32f   :  { %v3976_v36 = vpack.c.bf16 %v2212_v25, %v2206_v10  ;;  %v3925_v22 = vpack.c.bf16 %v2053_v54, %v2047_v13  ;;  %v2056_v9 = vpop.f32.mrb[148].mxu0 }
 0x330   :  { %v3973_v27 = vpack.c.bf16 %v2214_v60, %v2208_v17  ;;  %v2217_v28 = vpop.f32.mrb[148].mxu1  ;;  %v2058_v30 = vpop.f32.mrb[149].mxu0  ;;  %v2057_v48 = vadd.f32 %v2056_v9, %v5631_v45 }
 0x331   :  { %v2219_v52 = vpop.f32.mrb[149].mxu1  ;;  %3927 = vmatprep.subr.msk.bf16.mxu0 %vm5528_vm11, %v3925_v22  ;;  %v2218_v47 = vadd.f32 %v2217_v28, %v5631_v45  ;;  %v2059_v40 = vadd.f32 %v2058_v30, %v5631_v45 }
 0x332   :  { %3975 = vmatprep.subr.msk.bf16.mxu1 %vm5535_vm12, %v3973_v27  ;;  %3930 = vmatpush1.bf16.msk.msra.mxu0 %vm5518_vm7, %v3928_v31  ;;  %v2220_v44 = vadd.f32 %v2219_v52, %v5631_v45  ;;  %v5671_v52 = vpop.permute.xlu0 %1922 }
 0x333   :  { %3978 = vmatpush1.bf16.msk.msra.mxu1 %vm5523_vm6, %v3976_v36  ;;  %v2062_v55 = vpop.f32.mrb[150].mxu0 }
 0x334   :  { %v2063_v38 = vadd.f32 %v2062_v55, %v5637_v19  ;;  %v2223_v14 = vpop.f32.mrb[150].mxu1  ;;  %v2064_v39 = vpop.f32.mrb[151].mxu0 }
 0x335   :  { %v2224_v37 = vadd.f32 %v2223_v14, %v5637_v19  ;;  %v2065_v61 = vadd.f32 %v2064_v39, %v5637_v19  ;;  %v2225_v42 = vpop.f32.mrb[151].mxu1  ;;  %v5677_v55 = vpop.permute.xlu1 %1927 }
 0x336   :  { %v3934_v18 = vpack.c.bf16 %v2063_v38, %v2057_v48  ;;  %v2226_v7 = vadd.f32 %v2225_v42, %v5637_v19 }
 0x337   :  { %v3982_v56 = vpack.c.bf16 %v2224_v37, %v2218_v47  ;;  %v3931_v8 = vpack.c.bf16 %v2065_v61, %v2059_v40  ;;  %v2068_v11 = vpop.f32.mrb[152].mxu0 }
 0x338   :  { %v3979_v35 = vpack.c.bf16 %v2226_v7, %v2220_v44  ;;  %v2229_v12 = vpop.f32.mrb[152].mxu1  ;;  %v2070_v50 = vpop.f32.mrb[153].mxu0  ;;  %v2069_v29 = vadd.f32 %v2068_v11, %v5651_v51 }
 0x339   :  { %v2231_v32 = vpop.f32.mrb[153].mxu1  ;;  %3933 = vmatprep.subr.msk.bf16.mxu0 %vm5561_vm9, %v3931_v8  ;;  %v2230_v59 = vadd.f32 %v2229_v12, %v5651_v51  ;;  %v2071_v10 = vadd.f32 %v2070_v50, %v5651_v51  ;;  %v5699_v50 = vld [vmem:[%s5897_s4] sm:$0xff] }
 0x33a   :  { %3981 = vmatprep.subr.msk.bf16.mxu1 %vm5569_vm5, %v3979_v35  ;;  %3936 = vmatpush1.bf16.msk.msra.mxu0 %vm5553_vm1, %v3934_v18  ;;  %v2232_v26 = vadd.f32 %v2231_v32, %v5651_v51 }
 0x33b   :  { %3984 = vmatpush1.bf16.msk.msra.mxu1 %vm5557_vm4, %v3982_v56  ;;  %v2074_v15 = vpop.f32.mrb[154].mxu0 }
 0x33c   :  { %v2075_v2 = vadd.f32 %v2074_v15, %v5657_v58  ;;  %v2235_v4 = vpop.f32.mrb[154].mxu1  ;;  %v2076_v43 = vpop.f32.mrb[155].mxu0 }
 0x33d   :  { %v2236_v13 = vadd.f32 %v2235_v4, %v5657_v58  ;;  %v2077_v25 = vadd.f32 %v2076_v43, %v5657_v58  ;;  %v2237_v54 = vpop.f32.mrb[155].mxu1 }
 0x33e   :  { %v3940_v17 = vpack.c.bf16 %v2075_v2, %v2069_v29  ;;  %v2238_v31 = vadd.f32 %v2237_v54, %v5657_v58 }
 0x33f   :  { %v3988_v60 = vpack.c.bf16 %v2236_v13, %v2230_v59  ;;  %v3937_v36 = vpack.c.bf16 %v2077_v25, %v2071_v10  ;;  %v2080_v22 = vpop.f32.mrb[156].mxu0 }
 0x340   :  { %v3985_v9 = vpack.c.bf16 %v2238_v31, %v2232_v26  ;;  %v2241_v27 = vpop.f32.mrb[156].mxu1  ;;  %v2082_v28 = vpop.f32.mrb[157].mxu0  ;;  %v2081_v38 = vadd.f32 %v2080_v22, %v5671_v52 }
 0x341   :  { %v2243_v30 = vpop.f32.mrb[157].mxu1  ;;  %3939 = vmatprep.subr.msk.bf16.mxu0 %vm5528_vm11, %v3937_v36  ;;  %v2242_v47 = vadd.f32 %v2241_v27, %v5671_v52  ;;  %v2083_v16 = vadd.f32 %v2082_v28, %v5671_v52 }
 0x342   :  { %3987 = vmatprep.subr.msk.bf16.mxu1 %vm5535_vm12, %v3985_v9  ;;  %3942 = vmatpush1.bf16.msk.msra.mxu0 %vm5518_vm7, %v3940_v17  ;;  %v2244_v61 = vadd.f32 %v2243_v30, %v5671_v52 }
 0x343   :  { %3990 = vmatpush1.bf16.msk.msra.mxu1 %vm5523_vm6, %v3988_v60  ;;  %v2086_v48 = vpop.f32.mrb[158].mxu0 }
 0x344   :  { %v2087_v14 = vadd.f32 %v2086_v48, %v5677_v55  ;;  %v2247_v0 = vpop.f32.mrb[158].mxu1  ;;  %v2088_v39 = vpop.f32.mrb[159].mxu0 }
 0x345   :  { %v2248_v40 = vadd.f32 %v2247_v0, %v5677_v55  ;;  %v2089_v57 = vadd.f32 %v2088_v39, %v5677_v55  ;;  %v2249_v37 = vpop.f32.mrb[159].mxu1 }
 0x346   :  { %v3946_v41 = vpack.c.bf16 %v2087_v14, %v2081_v38  ;;  %v2250_v42 = vadd.f32 %v2249_v37, %v5677_v55 }
 0x347   :  { %v3994_v44 = vpack.c.bf16 %v2248_v40, %v2242_v47  ;;  %v3943_v18 = vpack.c.bf16 %v2089_v57, %v2083_v16 }
 0x348   :  { %v3991_v7 = vpack.c.bf16 %v2250_v42, %v2244_v61  ;;  %v2318_v56 = vpop.f32.mrb[160].mxu0 }
 0x349   :  { %v2479_v8 = vpop.f32.mrb[160].mxu1  ;;  %v2320_v11 = vpop.f32.mrb[161].mxu0  ;;  %3945 = vmatprep.subr.msk.bf16.mxu0 %vm5561_vm9, %v3943_v18  ;;  %v2319_v35 = vadd.f32 %v2318_v56, %v5504_v46 }
 0x34a   :  { %v2481_v12 = vpop.f32.mrb[161].mxu1  ;;  %3993 = vmatprep.subr.msk.bf16.mxu1 %vm5569_vm5, %v3991_v7  ;;  %3948 = vmatpush1.bf16.msk.msra.mxu0 %vm5553_vm1, %v3946_v41  ;;  %v2480_v32 = vadd.f32 %v2479_v8, %v5504_v46  ;;  %v2321_v15 = vadd.f32 %v2320_v11, %v5504_v46 }
 0x34b   :  { %3996 = vmatpush1.bf16.msk.msra.mxu1 %vm5557_vm4, %v3994_v44  ;;  %vm2578_vm7 = vcmp.gt.f32.partialorder %v2319_v35, 0.0  ;;  %v2482_v33 = vadd.f32 %v2481_v12, %v5504_v46 }
 0x34c   :  { %v2324_v49 = vpop.f32.mrb[162].mxu0  ;;  %vm2580_vm6 = vcmp.gt.f32.partialorder %v2480_v32, 0.0  ;;  %vm2579_vm2 = vcmp.gt.f32.partialorder %v2321_v15, 0.0 }
 0x34d   :  { %v2325_v29 = vadd.f32 %v2324_v49, %v5508_v24  ;;  %v2485_v62 = vpop.f32.mrb[162].mxu1  ;;  %v2326_v2 = vpop.f32.mrb[163].mxu0  ;;  %2806 = vmatmul.mubr.f32.vlgmr.msra.gmra.mrb[192].mxu0 %v5699_v50  ;;  %vm2581_vm13 = vcmp.gt.f32.partialorder %v2482_v33, 0.0 }
 0x34e   :  { %v2486_v4 = vadd.f32 %v2485_v62, %v5508_v24  ;;  %v2327_v43 = vadd.f32 %v2326_v2, %v5508_v24  ;;  %v2487_v59 = vpop.f32.mrb[163].mxu1  ;;  %2877 = vmatmul.mubr.f32.vlgmr.msra.gmra.mrb[192].mxu1 %v5699_v50  ;;  %2947 = vmatprep.mubr.f32.mxu0 %v4097_v3 }
 0x34f   :  { %vm2586_vm11 = vcmp.gt.f32.partialorder %v2325_v29, 0.0  ;;  %v4000_v1 = vpack.c.bf16 %v2325_v29, %v2319_v35  ;;  %v2488_v10 = vadd.f32 %v2487_v59, %v5508_v24  ;;  %3018 = vmatprep.mubr.f32.mxu1 %v4097_v3 }
 0x350   :  { %vm5714_vm12 = vmpackc.low %vm2586_vm11, %vm2578_vm7  ;;  %vm2588_vm15 = vcmp.gt.f32.partialorder %v2486_v4, 0.0  ;;  %v4048_v46 = vpack.c.bf16 %v2486_v4, %v2480_v32  ;;  %vm2587_vm0 = vcmp.gt.f32.partialorder %v2327_v43, 0.0  ;;  %v3997_v25 = vpack.c.bf16 %v2327_v43, %v2321_v15  ;;  %v2330_v54 = vpop.f32.mrb[164].mxu0 }
 0x351   :  { %vm5718_vm1 = vmpackc.low %vm2588_vm15, %vm2580_vm6  ;;  %vm2589_vm14 = vcmp.gt.f32.partialorder %v2488_v10, 0.0  ;;  %v4045_v17 = vpack.c.bf16 %v2488_v10, %v2482_v33  ;;  %v2491_v31 = vpop.f32.mrb[164].mxu1  ;;  %v2332_v24 = vpop.f32.mrb[165].mxu0  ;;  %v2331_v3 = vadd.f32 %v2330_v54, %v5516_v34 }
 0x352   :  { %v2493_v60 = vpop.f32.mrb[165].mxu1  ;;  %vm5723_vm3 = vmpackc.low %vm2587_vm0, %vm2579_vm2  ;;  %v2492_v22 = vadd.f32 %v2491_v31, %v5516_v34  ;;  %v2333_v28 = vadd.f32 %v2332_v24, %v5516_v34 }
 0x353   :  { %3999 = vmatprep.subr.msk.bf16.mxu0 %vm5723_vm3, %v3997_v25  ;;  %vm5730_vm4 = vmpackc.low %vm2589_vm14, %vm2581_vm13  ;;  %vm2594_vm8 = vcmp.gt.f32.partialorder %v2331_v3, 0.0  ;;  %v2494_v14 = vadd.f32 %v2493_v60, %v5516_v34 }
 0x354   :  { %4047 = vmatprep.subr.msk.bf16.mxu1 %vm5730_vm4, %v4045_v17  ;;  %4002 = vmatpush1.bf16.msk.msra.mxu0 %vm5714_vm12, %v4000_v1  ;;  %v2336_v27 = vpop.f32.mrb[166].mxu0  ;;  %vm2596_vm10 = vcmp.gt.f32.partialorder %v2492_v22, 0.0  ;;  %vm2595_vm11 = vcmp.gt.f32.partialorder %v2333_v28, 0.0 }
 0x355   :  { %4050 = vmatpush1.bf16.msk.msra.mxu1 %vm5718_vm1, %v4048_v46  ;;  %v2337_v30 = vadd.f32 %v2336_v27, %v5539_v21  ;;  %v2497_v48 = vpop.f32.mrb[166].mxu1  ;;  %v2338_v38 = vpop.f32.mrb[167].mxu0  ;;  %vm2597_vm2 = vcmp.gt.f32.partialorder %v2494_v14, 0.0 }
 0x356   :  { %v2498_v0 = vadd.f32 %v2497_v48, %v5539_v21  ;;  %v2339_v39 = vadd.f32 %v2338_v38, %v5539_v21  ;;  %v2499_v47 = vpop.f32.mrb[167].mxu1 }
 0x357   :  { %vm2602_vm9 = vcmp.gt.f32.partialorder %v2337_v30, 0.0  ;;  %v4006_v16 = vpack.c.bf16 %v2337_v30, %v2331_v3  ;;  %v2500_v40 = vadd.f32 %v2499_v47, %v5539_v21 }
 0x358   :  { %vm5746_vm5 = vmpackc.low %vm2602_vm9, %vm2594_vm8  ;;  %vm2604_vm7 = vcmp.gt.f32.partialorder %v2498_v0, 0.0  ;;  %v4054_v37 = vpack.c.bf16 %v2498_v0, %v2492_v22  ;;  %vm2603_vm6 = vcmp.gt.f32.partialorder %v2339_v39, 0.0  ;;  %v4003_v61 = vpack.c.bf16 %v2339_v39, %v2333_v28  ;;  %v2342_v41 = vpop.f32.mrb[168].mxu0 }
 0x359   :  { %vm5750_vm15 = vmpackc.low %vm2604_vm7, %vm2596_vm10  ;;  %vm2605_vm0 = vcmp.gt.f32.partialorder %v2500_v40, 0.0  ;;  %v4051_v42 = vpack.c.bf16 %v2500_v40, %v2494_v14  ;;  %v2503_v44 = vpop.f32.mrb[168].mxu1  ;;  %v2344_v18 = vpop.f32.mrb[169].mxu0  ;;  %v2343_v11 = vadd.f32 %v2342_v41, %v5565_v6 }
 0x35a   :  { %v2505_v21 = vpop.f32.mrb[169].mxu1  ;;  %vm5754_vm14 = vmpackc.low %vm2603_vm6, %vm2595_vm11  ;;  %v2504_v49 = vadd.f32 %v2503_v44, %v5565_v6  ;;  %v2345_v15 = vadd.f32 %v2344_v18, %v5565_v6 }
 0x35b   :  { %4005 = vmatprep.subr.msk.bf16.mxu0 %vm5754_vm14, %v4003_v61  ;;  %vm5760_vm13 = vmpackc.low %vm2605_vm0, %vm2597_vm2  ;;  %v2506_v33 = vadd.f32 %v2505_v21, %v5565_v6 }
 0x35c   :  { %4053 = vmatprep.subr.msk.bf16.mxu1 %vm5760_vm13, %v4051_v42  ;;  %4008 = vmatpush1.bf16.msk.msra.mxu0 %vm5746_vm5, %v4006_v16  ;;  %v2348_v8 = vpop.f32.mrb[170].mxu0 }
 0x35d   :  { %4056 = vmatpush1.bf16.msk.msra.mxu1 %vm5750_vm15, %v4054_v37  ;;  %v2349_v35 = vadd.f32 %v2348_v8, %v5573_v5  ;;  %v2509_v12 = vpop.f32.mrb[170].mxu1  ;;  %v2350_v32 = vpop.f32.mrb[171].mxu0 }
 0x35e   :  { %v2510_v29 = vadd.f32 %v2509_v12, %v5573_v5  ;;  %v2351_v62 = vadd.f32 %v2350_v32, %v5573_v5  ;;  %v2511_v2 = vpop.f32.mrb[171].mxu1 }
 0x35f   :  { %v4012_v4 = vpack.c.bf16 %v2349_v35, %v2343_v11  ;;  %v2512_v43 = vadd.f32 %v2511_v2, %v5573_v5 }
 0x360   :  { %v4060_v59 = vpack.c.bf16 %v2510_v29, %v2504_v49  ;;  %v4009_v1 = vpack.c.bf16 %v2351_v62, %v2345_v15  ;;  %v2354_v10 = vpop.f32.mrb[172].mxu0 }
 0x361   :  { %v4057_v46 = vpack.c.bf16 %v2512_v43, %v2506_v33  ;;  %v2515_v25 = vpop.f32.mrb[172].mxu1  ;;  %v2356_v54 = vpop.f32.mrb[173].mxu0  ;;  %v2355_v5 = vadd.f32 %v2354_v10, %v5591_v23 }
 0x362   :  { %v2517_v17 = vpop.f32.mrb[173].mxu1  ;;  %4011 = vmatprep.subr.msk.bf16.mxu0 %vm5723_vm3, %v4009_v1  ;;  %v2516_v60 = vadd.f32 %v2515_v25, %v5591_v23  ;;  %v2357_v22 = vadd.f32 %v2356_v54, %v5591_v23 }
 0x363   :  { %4059 = vmatprep.subr.msk.bf16.mxu1 %vm5730_vm4, %v4057_v46  ;;  %4014 = vmatpush1.bf16.msk.msra.mxu0 %vm5714_vm12, %v4012_v4  ;;  %v2518_v48 = vadd.f32 %v2517_v17, %v5591_v23 }
 0x364   :  { %4062 = vmatpush1.bf16.msk.msra.mxu1 %vm5718_vm1, %v4060_v59  ;;  %v2360_v6 = vpop.f32.mrb[174].mxu0 }
 0x365   :  { %v2361_v31 = vadd.f32 %v2360_v6, %v5597_v53  ;;  %v2521_v24 = vpop.f32.mrb[174].mxu1  ;;  %v2362_v3 = vpop.f32.mrb[175].mxu0 }
 0x366   :  { %v2522_v27 = vadd.f32 %v2521_v24, %v5597_v53  ;;  %v2363_v28 = vadd.f32 %v2362_v3, %v5597_v53  ;;  %v2523_v30 = vpop.f32.mrb[175].mxu1 }
 0x367   :  { %v4018_v38 = vpack.c.bf16 %v2361_v31, %v2355_v5  ;;  %v2524_v14 = vadd.f32 %v2523_v30, %v5597_v53 }
 0x368   :  { %v4066_v0 = vpack.c.bf16 %v2522_v27, %v2516_v60  ;;  %v4015_v39 = vpack.c.bf16 %v2363_v28, %v2357_v22  ;;  %v2366_v47 = vpop.f32.mrb[176].mxu0 }
 0x369   :  { %v4063_v16 = vpack.c.bf16 %v2524_v14, %v2518_v48  ;;  %v2527_v40 = vpop.f32.mrb[176].mxu1  ;;  %v2368_v37 = vpop.f32.mrb[177].mxu0  ;;  %v2367_v53 = vadd.f32 %v2366_v47, %v5611_v63 }
 0x36a   :  { %v2529_v61 = vpop.f32.mrb[177].mxu1  ;;  %4017 = vmatprep.subr.msk.bf16.mxu0 %vm5754_vm14, %v4015_v39  ;;  %v2528_v18 = vadd.f32 %v2527_v40, %v5611_v63  ;;  %v2369_v21 = vadd.f32 %v2368_v37, %v5611_v63 }
 0x36b   :  { %4065 = vmatprep.subr.msk.bf16.mxu1 %vm5760_vm13, %v4063_v16  ;;  %4020 = vmatpush1.bf16.msk.msra.mxu0 %vm5746_vm5, %v4018_v38  ;;  %v2530_v12 = vadd.f32 %v2529_v61, %v5611_v63 }
 0x36c   :  { %4068 = vmatpush1.bf16.msk.msra.mxu1 %vm5750_vm15, %v4066_v0  ;;  %v2372_v23 = vpop.f32.mrb[178].mxu0 }
 0x36d   :  { %v2373_v41 = vadd.f32 %v2372_v23, %v5617_v20  ;;  %v2533_v42 = vpop.f32.mrb[178].mxu1  ;;  %v2374_v44 = vpop.f32.mrb[179].mxu0 }
 0x36e   :  { %v2534_v8 = vadd.f32 %v2533_v42, %v5617_v20  ;;  %v2375_v11 = vadd.f32 %v2374_v44, %v5617_v20  ;;  %v2535_v35 = vpop.f32.mrb[179].mxu1 }
 0x36f   :  { %v4024_v32 = vpack.c.bf16 %v2373_v41, %v2367_v53  ;;  %v2536_v49 = vadd.f32 %v2535_v35, %v5617_v20 }
 0x370   :  { %v4072_v15 = vpack.c.bf16 %v2534_v8, %v2528_v18  ;;  %v4021_v29 = vpack.c.bf16 %v2375_v11, %v2369_v21  ;;  %v2378_v62 = vpop.f32.mrb[180].mxu0 }
 0x371   :  { %v4069_v2 = vpack.c.bf16 %v2536_v49, %v2530_v12  ;;  %v2539_v33 = vpop.f32.mrb[180].mxu1  ;;  %v2380_v4 = vpop.f32.mrb[181].mxu0  ;;  %v2379_v20 = vadd.f32 %v2378_v62, %v5631_v45 }
 0x372   :  { %v2541_v43 = vpop.f32.mrb[181].mxu1  ;;  %4023 = vmatprep.subr.msk.bf16.mxu0 %vm5723_vm3, %v4021_v29  ;;  %v2540_v46 = vadd.f32 %v2539_v33, %v5631_v45  ;;  %v2381_v25 = vadd.f32 %v2380_v4, %v5631_v45 }
 0x373   :  { %4071 = vmatprep.subr.msk.bf16.mxu1 %vm5730_vm4, %v4069_v2  ;;  %4026 = vmatpush1.bf16.msk.msra.mxu0 %vm5714_vm12, %v4024_v32  ;;  %v2542_v5 = vadd.f32 %v2541_v43, %v5631_v45 }
 0x374   :  { %4074 = vmatpush1.bf16.msk.msra.mxu1 %vm5718_vm1, %v4072_v15  ;;  %v2384_v63 = vpop.f32.mrb[182].mxu0 }
 0x375   :  { %v2385_v59 = vadd.f32 %v2384_v63, %v5637_v19  ;;  %v2545_v1 = vpop.f32.mrb[182].mxu1  ;;  %v2386_v10 = vpop.f32.mrb[183].mxu0 }
 0x376   :  { %v2546_v54 = vadd.f32 %v2545_v1, %v5637_v19  ;;  %v2387_v17 = vadd.f32 %v2386_v10, %v5637_v19  ;;  %v2547_v6 = vpop.f32.mrb[183].mxu1 }
 0x377   :  { %v4030_v31 = vpack.c.bf16 %v2385_v59, %v2379_v20  ;;  %v2548_v24 = vadd.f32 %v2547_v6, %v5637_v19 }
 0x378   :  { %v4078_v3 = vpack.c.bf16 %v2546_v54, %v2540_v46  ;;  %v4027_v60 = vpack.c.bf16 %v2387_v17, %v2381_v25  ;;  %v2390_v22 = vpop.f32.mrb[184].mxu0 }
 0x379   :  { %v4075_v27 = vpack.c.bf16 %v2548_v24, %v2542_v5  ;;  %v2551_v28 = vpop.f32.mrb[184].mxu1  ;;  %v2392_v30 = vpop.f32.mrb[185].mxu0  ;;  %v2391_v19 = vadd.f32 %v2390_v22, %v5651_v51 }
 0x37a   :  { %v2553_v48 = vpop.f32.mrb[185].mxu1  ;;  %4029 = vmatprep.subr.msk.bf16.mxu0 %vm5754_vm14, %v4027_v60  ;;  %v2552_v39 = vadd.f32 %v2551_v28, %v5651_v51  ;;  %v2393_v47 = vadd.f32 %v2392_v30, %v5651_v51 }
 0x37b   :  { %4077 = vmatprep.subr.msk.bf16.mxu1 %vm5760_vm13, %v4075_v27  ;;  %4032 = vmatpush1.bf16.msk.msra.mxu0 %vm5746_vm5, %v4030_v31  ;;  %v2554_v61 = vadd.f32 %v2553_v48, %v5651_v51 }
 0x37c   :  { %4080 = vmatpush1.bf16.msk.msra.mxu1 %vm5750_vm15, %v4078_v3  ;;  %v2396_v45 = vpop.f32.mrb[186].mxu0 }
 0x37d   :  { %v2397_v38 = vadd.f32 %v2396_v45, %v5657_v58  ;;  %v2557_v14 = vpop.f32.mrb[186].mxu1  ;;  %v2398_v0 = vpop.f32.mrb[187].mxu0 }
 0x37e   :  { %v2558_v16 = vadd.f32 %v2557_v14, %v5657_v58  ;;  %v2399_v40 = vadd.f32 %v2398_v0, %v5657_v58  ;;  %v2559_v37 = vpop.f32.mrb[187].mxu1 }
 0x37f   :  { %v4036_v23 = vpack.c.bf16 %v2397_v38, %v2391_v19  ;;  %v2560_v53 = vadd.f32 %v2559_v37, %v5657_v58 }
 0x380   :  { %v4084_v41 = vpack.c.bf16 %v2558_v16, %v2552_v39  ;;  %v4033_v42 = vpack.c.bf16 %v2399_v40, %v2393_v47  ;;  %v2402_v44 = vpop.f32.mrb[188].mxu0 }
 0x381   :  { %v4081_v18 = vpack.c.bf16 %v2560_v53, %v2554_v61  ;;  %v2563_v21 = vpop.f32.mrb[188].mxu1  ;;  %v2404_v8 = vpop.f32.mrb[189].mxu0  ;;  %v2403_v58 = vadd.f32 %v2402_v44, %v5671_v52 }
 0x382   :  { %v2565_v11 = vpop.f32.mrb[189].mxu1  ;;  %4035 = vmatprep.subr.msk.bf16.mxu0 %vm5723_vm3, %v4033_v42  ;;  %v2564_v49 = vadd.f32 %v2563_v21, %v5671_v52  ;;  %v2405_v36 = vadd.f32 %v2404_v8, %v5671_v52 }
 0x383   :  { %4083 = vmatprep.subr.msk.bf16.mxu1 %vm5730_vm4, %v4081_v18  ;;  %4038 = vmatpush1.bf16.msk.msra.mxu0 %vm5714_vm12, %v4036_v23  ;;  %v2566_v29 = vadd.f32 %v2565_v11, %v5671_v52  ;;  %v2739_v52 = vpop.permute.xlu0 %2738 }
 0x384   :  { %4086 = vmatpush1.bf16.msk.msra.mxu1 %vm5718_vm1, %v4084_v41  ;;  %v2408_v51 = vpop.f32.mrb[190].mxu0 }
 0x385   :  { %v2409_v35 = vadd.f32 %v2408_v51, %v5677_v55  ;;  %v2569_v12 = vpop.f32.mrb[190].mxu1  ;;  %v2410_v32 = vpop.f32.mrb[191].mxu0 }
 0x386   :  { %v2570_v9 = vadd.f32 %v2569_v12, %v5677_v55  ;;  %v2411_v15 = vadd.f32 %v2410_v32, %v5677_v55  ;;  %v2571_v13 = vpop.f32.mrb[191].mxu1 }
 0x387   :  { %v4042_v26 = vpack.c.bf16 %v2409_v35, %v2403_v58  ;;  %v2572_v62 = vadd.f32 %v2571_v13, %v5677_v55 }
 0x388   :  { %v4090_v2 = vpack.c.bf16 %v2570_v9, %v2564_v49  ;;  %v4039_v33 = vpack.c.bf16 %v2411_v15, %v2405_v36 }
 0x389   :  { %v4087_v4 = vpack.c.bf16 %v2572_v62, %v2566_v29 }
 0x38a   :  { %4041 = vmatprep.subr.msk.bf16.mxu0 %vm5754_vm14, %v4039_v33 }
 0x38b   :  { %4089 = vmatprep.subr.msk.bf16.mxu1 %vm5760_vm13, %v4087_v4  ;;  %4044 = vmatpush1.bf16.msk.msra.mxu0 %vm5746_vm5, %v4042_v26 }
 0x38c   :  { %4092 = vmatpush1.bf16.msk.msra.mxu1 %vm5750_vm15, %v4090_v2 }
 0x38e   :  { %2948 = vmatmul.mubr.f32.vlgmr.msra.gmra.mrb[194].mxu0 %v5699_v50 }
 0x38f   :  { %3019 = vmatmul.mubr.f32.vlgmr.msra.gmra.mrb[194].mxu1 %v5699_v50 }
 0x420   :  { %v2807_v55 = vpop.f32.mrb[192].mxu0 }
 0x421   :  { %v2808_v43 = vadd.f32 %v2807_v55, %v2739_v52  ;;  %v2878_v63 = vpop.f32.mrb[192].mxu1  ;;  %v2809_v20 = vpop.f32.mrb[193].mxu0 }
 0x422   :  { %v2879_v7 = vadd.f32 %v2878_v63, %v2739_v52  ;;  %v2810_v59 = vadd.f32 %v2809_v20, %v2739_v52  ;;  %v2880_v1 = vpop.f32.mrb[193].mxu1 }
 0x423   :  { %3025 = vst [vmem:[%s5898_s6] sm:$0xff] %v2808_v43  ;;  %v2881_v57 = vadd.f32 %v2880_v1, %v2739_v52 }
 0x424   :  { %3027 = vst [vmem:[%s5898_s6 + $0x10] sm:$0xff] %v2879_v7  ;;  %3026 = vst [vmem:[%s5898_s6 + $0x8] sm:$0xff] %v2810_v59 }
 0x425   :  { %3028 = vst [vmem:[%s5898_s6 + $0x18] sm:$0xff] %v2881_v57 }
 0x461   :  { %v2949_v50 = vpop.f32.mrb[194].mxu0 }
 0x462   :  { %v2950_v34 = vadd.f32 %v2949_v50, %v2739_v52  ;;  %v3020_v56 = vpop.f32.mrb[194].mxu1  ;;  %v2951_v10 = vpop.f32.mrb[195].mxu0 }
 0x463   :  { %v3021_v46 = vadd.f32 %v3020_v56, %v2739_v52  ;;  %v2952_v25 = vadd.f32 %v2951_v10, %v2739_v52  ;;  %v3022_v54 = vpop.f32.mrb[195].mxu1 }
 0x464   :  { %3029 = vst [vmem:[%s5898_s6 + $0x20] sm:$0xff] %v2950_v34  ;;  %v3023_v17 = vadd.f32 %v3022_v54, %v2739_v52 }
 0x465   :  { %3031 = vst [vmem:[%s5898_s6 + $0x30] sm:$0xff] %v3021_v46  ;;  %3030 = vst [vmem:[%s5898_s6 + $0x28] sm:$0xff] %v2952_v25 }
 0x466   :  { %3032 = vst [vmem:[%s5898_s6 + $0x38] sm:$0xff] %v3023_v17 }

</bundles_post_ra>
